<compile_context>
chip_gen: v6e
topology: v6e:2x2x1
jax: 0.10.0
libtpu: 0.0.40
codegen_flags: <defaults>
</compile_context>

<pallas_src>
import jax
import jax.numpy as jnp
import numpy as np
from jax import lax
from jax.experimental import pallas as pl
from jax.experimental.pallas import tpu as pltpu


def _round_up(x, m):
    return ((x + m - 1) // m) * m


def _reorder_gates(w):
    """Reorder the last (4H) axis from PyTorch [i,f,g,o] to kernel [i,f,o,g]."""
    H = w.shape[-1] // 4
    return jnp.concatenate([w[..., :2 * H], w[..., 3 * H:], w[..., 2 * H:3 * H]], axis=-1)


def _full_spec(shape):
    n = len(shape)
    return pl.BlockSpec(shape, lambda i, n=n: (0,) * n)


def _default_vmem_limit_bytes():
    # v5e/v6e have 128 MiB physical VMEM; v7x only 64 MiB -> leave headroom.
    try:
        kind = jax.devices()[0].device_kind.lower()
    except Exception:
        kind = ""
    if "v5" in kind or "v6" in kind:
        return 100 * 1024 * 1024
    return 48 * 1024 * 1024


def _bilstm_classifier_kernel(emb_ref,                 # (T, Bt, E)    matmul dtype
                              w_ih_ref,                # (E, 8H)       matmul dtype (fwd|bwd fused, [i,f,o,g])
                              b_g_ref,                 # (1, 8H)       f32 (fused biases)
                              w_hh_ref,                # (2H, 8H)      matmul dtype, block-diagonal
                              w_cls_f_ref,             # (H, C_pad)    matmul dtype
                              w_cls_b_ref,             # (H, C_pad)    matmul dtype
                              b_cls_ref,               # (1, C_pad)    f32
                              out_ref,                 # (T, Bt, C_pad)
                              xg_ref,                  # scratch (T, Bt, 8H), scratch dtype, time-major
                              hs_f_ref, hs_b_ref):     # scratch (T, Bt, H),  scratch dtype, time-major
    T, Bt, E = emb_ref.shape
    H = w_hh_ref.shape[0] // 2
    G = 4 * H
    mm_dtype = w_hh_ref.dtype
    sd = xg_ref.dtype

    # ---- Input projection for BOTH directions in one fused MXU matmul (K=E, N=8H) ----
    x = emb_ref[...].reshape(T * Bt, E)
    xg = jnp.dot(x, w_ih_ref[...], preferred_element_type=jnp.float32)      # (T*Bt, 8H) f32
    xg = xg + b_g_ref[...]
    xg_ref[...] = xg.reshape(T, Bt, 2 * G).astype(sd)

    def cell_half(g, c):
        # Gate order [i, f, o, g]: sigmoid only on the first 3H lanes, tanh on the last H.
        sg = jax.nn.sigmoid(g[:, :3 * H])
        gg = jnp.tanh(g[:, 3 * H:])
        c_new = sg[:, H:2 * H] * c + sg[:, :H] * gg
        h_new = sg[:, 2 * H:] * jnp.tanh(c_new)
        return h_new, c_new

    # ---- Merged fwd/bwd recurrence: ONE block-diagonal hidden matmul per step ----
    def step(i, carry):
        h, c = carry                                   # h, c: (Bt, 2H) f32, [fwd | bwd] lane halves
        tb = T - 1 - i
        hh = jnp.dot(h.astype(mm_dtype), w_hh_ref[...],
                     preferred_element_type=jnp.float32)                    # (Bt, 8H) f32
        g_f = xg_ref[i][:, :G] + hh[:, :G]
        g_b = xg_ref[tb][:, G:] + hh[:, G:]
        h_f, c_f = cell_half(g_f, c[:, :H])
        h_b, c_b = cell_half(g_b, c[:, H:])
        hs_f_ref[i] = h_f.astype(sd)                   # contiguous (Bt, H) time-major stores
        hs_b_ref[tb] = h_b.astype(sd)
        return (jnp.concatenate([h_f, h_b], axis=-1),
                jnp.concatenate([c_f, c_b], axis=-1))

    z = jnp.zeros((Bt, 2 * H), jnp.float32)
    lax.fori_loop(0, T, step, (z, z), unroll=(True if T <= 32 else 8))

    # ---- Classifier: split matmul per direction (no lane-axis concat of fwd/bwd) ----
    hf = hs_f_ref[...].reshape(T * Bt, H)
    hb = hs_b_ref[...].reshape(T * Bt, H)
    logits = (jnp.dot(hf, w_cls_f_ref[...], preferred_element_type=jnp.float32)
              + jnp.dot(hb, w_cls_b_ref[...], preferred_element_type=jnp.float32)
              + b_cls_ref[...])
    out_ref[...] = logits.reshape(T, Bt, -1).astype(out_ref.dtype)           # lane-dense (C_pad) store


def seq_model_forward(params, x_ids, *, matmul_dtype=jnp.bfloat16,
                      batch_tile=None, vmem_limit_bytes=None):
    """Embedding gather in plain JAX (glue); BiLSTM + classifier in one Pallas kernel."""
    E = params['embedding'].shape[1]
    H = params['w_hh_f'].shape[0]
    C = params['w_cls'].shape[1]
    B, T = x_ids.shape
    C_pad = _round_up(C, 128)

    exact = np.dtype(matmul_dtype) == np.dtype(np.float32)
    out_dtype = jnp.float32 if exact else jnp.bfloat16
    sd = matmul_dtype                                   # scratch dtype for xg / hs

    # Gather directly in time-major: (T, B, E).  Dropout is identity in eval mode.
    # TODO(synk): training-mode dropout would need pltpu.prng_seed/prng_random_bits.
    emb_tm = jnp.take(params['embedding'], x_ids.T, axis=0).astype(matmul_dtype)

    # Batch tile: as large as the (padded) batch allows, capped at 128.
    # (For v7x prefer B_pad//Bt >= 2 so both TensorCores get work; with tiny B that's moot.)
    if batch_tile is None:
        batch_tile = max(8, min(128, _round_up(B, 8)))
    Bt = batch_tile
    B_pad = _round_up(B, Bt)
    if B_pad != B:
        emb_tm = jnp.pad(emb_tm, ((0, 0), (0, B_pad - B), (0, 0)))

    # Gate reorder [i,f,g,o] -> [i,f,o,g], then fuse fwd|bwd.
    w_ih_f = _reorder_gates(params['w_ih_f'])
    w_ih_b = _reorder_gates(params['w_ih_b'])
    w_hh_f = _reorder_gates(params['w_hh_f'])
    w_hh_b = _reorder_gates(params['w_hh_b'])
    b_f = _reorder_gates(params['b_f'])
    b_b = _reorder_gates(params['b_b'])

    w_ih = jnp.concatenate([w_ih_f, w_ih_b], axis=1).astype(matmul_dtype)    # (E, 8H)
    b_g = jnp.concatenate([b_f, b_b], axis=1).astype(jnp.float32)            # (1, 8H)

    # Block-diagonal hidden weight so [h_f | h_b] @ W does both directions in one matmul.
    zeros = jnp.zeros((H, 4 * H), jnp.float32)
    w_hh = jnp.concatenate(
        [jnp.concatenate([w_hh_f, zeros], axis=1),
         jnp.concatenate([zeros, w_hh_b], axis=1)], axis=0).astype(matmul_dtype)   # (2H, 8H)

    # Lane-dense classifier: pad class dim to a multiple of 128, split per direction.
    w_cls = jnp.pad(params['w_cls'], ((0, 0), (0, C_pad - C)))
    b_cls = jnp.pad(params['b_cls'], ((0, 0), (0, C_pad - C))).astype(jnp.float32)
    w_cls_f = w_cls[:H].astype(matmul_dtype)
    w_cls_b = w_cls[H:].astype(matmul_dtype)

    if vmem_limit_bytes is None:
        vmem_limit_bytes = _default_vmem_limit_bytes()

    grid = (B_pad // Bt,)

    out_tm = pl.pallas_call(
        _bilstm_classifier_kernel,
        out_shape=jax.ShapeDtypeStruct((T, B_pad, C_pad), out_dtype),
        grid_spec=pltpu.PrefetchScalarGridSpec(
            num_scalar_prefetch=0,
            grid=grid,
            in_specs=[
                pl.BlockSpec((T, Bt, E), lambda i: (0, i, 0)),   # activations, tiled over batch
                _full_spec((E, 8 * H)),
                _full_spec((1, 8 * H)),
                _full_spec((2 * H, 8 * H)),
                _full_spec((H, C_pad)),
                _full_spec((H, C_pad)),
                _full_spec((1, C_pad)),
            ],
            out_specs=pl.BlockSpec((T, Bt, C_pad), lambda i: (0, i, 0)),
            scratch_shapes=[
                pltpu.VMEM((T, Bt, 8 * H), sd),    # fused xg, time-major
                pltpu.VMEM((T, Bt, H), sd),        # hs fwd
                pltpu.VMEM((T, Bt, H), sd),        # hs bwd
            ]),
        compiler_params=pltpu.CompilerParams(
            dimension_semantics=("parallel",),
            vmem_limit_bytes=vmem_limit_bytes),
    )(emb_tm, w_ih, b_g, w_hh, w_cls_f, w_cls_b, b_cls)

    # Drop batch/class padding BEFORE the transpose (smaller transpose volume).
    return jnp.transpose(out_tm[:, :B, :C], (1, 0, 2)).astype(jnp.float32)


def seq_model_reference(params, x_ids):
    """Pure-JAX f32 reference mirroring the PyTorch module (for correctness check)."""
    emb = jnp.take(params['embedding'], x_ids, axis=0)          # (B, T, E) f32
    B, T, E = emb.shape
    H = params['w_hh_f'].shape[0]

    def run(w_ih, w_hh, b, reverse):
        xg = jnp.einsum('bte,eg->btg', emb, w_ih) + b[0]        # (B, T, 4H), [i,f,g,o]
        h = jnp.zeros((B, H), jnp.float32)
        c = jnp.zeros((B, H), jnp.float32)
        hs = [None] * T
        ts = range(T - 1, -1, -1) if reverse else range(T)
        for t in ts:
            g = xg[:, t] + jnp.dot(h, w_hh)
            i_g = jax.nn.sigmoid(g[:, :H])
            f_g = jax.nn.sigmoid(g[:, H:2 * H])
            g_g = jnp.tanh(g[:, 2 * H:3 * H])
            o_g = jax.nn.sigmoid(g[:, 3 * H:])
            c = f_g * c + i_g * g_g
            h = o_g * jnp.tanh(c)
            hs[t] = h
        return jnp.stack(hs, axis=1)                            # (B, T, H)

    hs_f = run(params['w_ih_f'], params['w_hh_f'], params['b_f'], False)
    hs_b = run(params['w_ih_b'], params['w_hh_b'], params['b_b'], True)
    w_cls = params['w_cls']
    return jnp.dot(hs_f, w_cls[:H]) + jnp.dot(hs_b, w_cls[H:]) + params['b_cls'][0]


def init_params(key, vocab_size, embedding_dim, hidden_dim, num_classes):
    E, H, C = embedding_dim, hidden_dim, num_classes
    ks = jax.random.split(key, 9)

    def unif(k, shape, bound):
        return jax.random.uniform(k, shape, jnp.float32, -bound, bound)

    k_lstm = 1.0 / float(H) ** 0.5
    k_cls = 1.0 / float(2 * H) ** 0.5
    return dict(
        embedding=jax.random.normal(ks[0], (vocab_size, E), jnp.float32),
        w_ih_f=unif(ks[1], (E, 4 * H), k_lstm),
        w_hh_f=unif(ks[2], (H, 4 * H), k_lstm),
        b_f=unif(ks[3], (1, 4 * H), k_lstm),
        w_ih_b=unif(ks[4], (E, 4 * H), k_lstm),
        w_hh_b=unif(ks[5], (H, 4 * H), k_lstm),
        b_b=unif(ks[6], (1, 4 * H), k_lstm),
        w_cls=unif(ks[7], (2 * H, C), k_cls),
        b_cls=unif(ks[8], (1, C), k_cls),
    )


if __name__ == "__main__":
    hp = dict(vocab_size=50, embedding_dim=32, hidden_dim=32,
              num_classes=8, dropout=0.1)
    key = jax.random.PRNGKey(0)
    pkey, xkey = jax.random.split(key)
    params = init_params(pkey, hp['vocab_size'], hp['embedding_dim'],
                         hp['hidden_dim'], hp['num_classes'])

    B, T = 2, 8
    x_ids = jax.random.randint(xkey, (B, T), 0, hp['vocab_size'], jnp.int32)

    ref = seq_model_reference(params, x_ids)

    # Exact-precision path: f32 matmuls + f32 scratch, tight check.
    out_f32 = jax.block_until_ready(
        seq_model_forward(params, x_ids, matmul_dtype=jnp.float32))
    assert out_f32.shape == (B, T, hp['num_classes'])
    assert jnp.allclose(out_f32, ref, atol=2e-3, rtol=2e-3), \
        float(jnp.max(jnp.abs(out_f32 - ref)))

    # Fast path (default): bf16 MXU operands + bf16 scratch/output, loose check vs f32 reference.
    out_bf16 = jax.block_until_ready(seq_model_forward(params, x_ids))
    assert out_bf16.shape == (B, T, hp['num_classes'])
    assert jnp.allclose(out_bf16, ref, atol=5e-2, rtol=5e-2), \
        float(jnp.max(jnp.abs(out_bf16 - ref)))

    print("KERNEL_OK")
</pallas_src>

<mosaic_0001>
module attributes {stable_mosaic.version = 11 : i64} {
  func.func @_bilstm_classifier_kernel(%arg0: i32, %arg1: memref<8x8x32xf32, #tpu.memory_space<vmem>>, %arg2: memref<32x256xf32, #tpu.memory_space<vmem>>, %arg3: memref<1x256xf32, #tpu.memory_space<vmem>>, %arg4: memref<64x256xf32, #tpu.memory_space<vmem>>, %arg5: memref<32x128xf32, #tpu.memory_space<vmem>>, %arg6: memref<32x128xf32, #tpu.memory_space<vmem>>, %arg7: memref<1x128xf32, #tpu.memory_space<vmem>>, %arg8: memref<8x8x128xf32, #tpu.memory_space<vmem>>, %arg9: memref<8x8x256xf32, #tpu.memory_space<vmem>>, %arg10: memref<8x8x32xf32, #tpu.memory_space<vmem>>, %arg11: memref<8x8x32xf32, #tpu.memory_space<vmem>>) attributes {dimension_semantics = [#tpu.dimension_semantics<parallel>], iteration_bounds = array<i64: 1>, scalar_prefetch = 0 : i64, scratch_operands = 3 : i64, tpu.core_type = #tpu.core_type<tc>, window_params = [{transform_indices = @transform_0, window_bounds = array<i64: 8, 8, 32>}, {pipeline_mode = #tpu.pipeline_mode<synchronous>, transform_indices = @transform_1, window_bounds = array<i64: 32, 256>}, {pipeline_mode = #tpu.pipeline_mode<synchronous>, transform_indices = @transform_2, window_bounds = array<i64: 1, 256>}, {pipeline_mode = #tpu.pipeline_mode<synchronous>, transform_indices = @transform_3, window_bounds = array<i64: 64, 256>}, {pipeline_mode = #tpu.pipeline_mode<synchronous>, transform_indices = @transform_4, window_bounds = array<i64: 32, 128>}, {pipeline_mode = #tpu.pipeline_mode<synchronous>, transform_indices = @transform_5, window_bounds = array<i64: 32, 128>}, {pipeline_mode = #tpu.pipeline_mode<synchronous>, transform_indices = @transform_6, window_bounds = array<i64: 1, 128>}, {transform_indices = @transform_7, window_bounds = array<i64: 8, 8, 128>}]} {
    %c0 = arith.constant 0 : index
    %c0_0 = arith.constant 0 : index
    %c0_1 = arith.constant 0 : index
    %0 = vector.load %arg1[%c0, %c0_0, %c0_1] : memref<8x8x32xf32, #tpu.memory_space<vmem>>, vector<8x8x32xf32>
    %1 = vector.shape_cast %0 : vector<8x8x32xf32> to vector<64x32xf32>
    %c0_2 = arith.constant 0 : index
    %c0_3 = arith.constant 0 : index
    %2 = vector.load %arg2[%c0_2, %c0_3] : memref<32x256xf32, #tpu.memory_space<vmem>>, vector<32x256xf32>
    %cst = arith.constant dense<0.000000e+00> : vector<64x256xf32>
    %3 = tpu.matmul %1, %2, %cst {dimension_numbers = #tpu.dot_dimension_numbers<[1], [0], [0], [1], [0, 0, 1, 1], [], []>} : vector<64x32xf32>, vector<32x256xf32>, vector<64x256xf32> -> vector<64x256xf32>
    %c0_4 = arith.constant 0 : index
    %c0_5 = arith.constant 0 : index
    %4 = vector.load %arg3[%c0_4, %c0_5] : memref<1x256xf32, #tpu.memory_space<vmem>>, vector<1x256xf32>
    %5 = vector.broadcast %4 : vector<1x256xf32> to vector<64x256xf32>
    %6 = arith.addf %3, %5 : vector<64x256xf32>
    %7 = vector.shape_cast %6 : vector<64x256xf32> to vector<8x8x256xf32>
    %c0_6 = arith.constant 0 : index
    %c0_7 = arith.constant 0 : index
    %c0_8 = arith.constant 0 : index
    %8 = vector.load %arg9[%c0_6, %c0_7, %c0_8] : memref<8x8x256xf32, #tpu.memory_space<vmem>>, vector<8x8x256xf32>
    tpu.vector_store %arg9[%c0_6, %c0_7, %c0_8], %7 {strides = array<i32>} : memref<8x8x256xf32, #tpu.memory_space<vmem>>, vector<8x8x256xf32>,
    %cst_9 = arith.constant 0.000000e+00 : f32
    %9 = vector.broadcast %cst_9 : f32 to vector<8x64xf32>
    %c0_i32 = arith.constant 0 : i32
    %c7_i32 = arith.constant 7 : i32
    %10 = arith.subi %c7_i32, %c0_i32 : i32
    %c0_10 = arith.constant 0 : index
    %c0_11 = arith.constant 0 : index
    %11 = vector.load %arg4[%c0_10, %c0_11] : memref<64x256xf32, #tpu.memory_space<vmem>>, vector<64x256xf32>
    %cst_12 = arith.constant dense<0.000000e+00> : vector<8x256xf32>
    %12 = tpu.matmul %9, %11, %cst_12 {dimension_numbers = #tpu.dot_dimension_numbers<[1], [0], [0], [1], [0, 0, 1, 1], [], []>} : vector<8x64xf32>, vector<64x256xf32>, vector<8x256xf32> -> vector<8x256xf32>
    %13 = arith.index_cast %c0_i32 : i32 to index
    %c0_13 = arith.constant 0 : index
    %c0_14 = arith.constant 0 : index
    %14 = vector.load %arg9[%13, %c0_13, %c0_14] : memref<8x8x256xf32, #tpu.memory_space<vmem>>, vector<1x8x256xf32>
    %15 = vector.shape_cast %14 : vector<1x8x256xf32> to vector<8x256xf32>
    %16 = vector.extract_strided_slice %15 {offsets = [0, 0], sizes = [8, 128], strides = [1, 1]} : vector<8x256xf32> to vector<8x128xf32>
    %17 = vector.extract_strided_slice %12 {offsets = [0, 0], sizes = [8, 128], strides = [1, 1]} : vector<8x256xf32> to vector<8x128xf32>
    %18 = arith.addf %16, %17 : vector<8x128xf32>
    %19 = arith.index_cast %10 : i32 to index
    %c0_15 = arith.constant 0 : index
    %c0_16 = arith.constant 0 : index
    %20 = vector.load %arg9[%19, %c0_15, %c0_16] : memref<8x8x256xf32, #tpu.memory_space<vmem>>, vector<1x8x256xf32>
    %21 = vector.shape_cast %20 : vector<1x8x256xf32> to vector<8x256xf32>
    %22 = vector.extract_strided_slice %21 {offsets = [0, 128], sizes = [8, 128], strides = [1, 1]} : vector<8x256xf32> to vector<8x128xf32>
    %23 = vector.extract_strided_slice %12 {offsets = [0, 128], sizes = [8, 128], strides = [1, 1]} : vector<8x256xf32> to vector<8x128xf32>
    %24 = arith.addf %22, %23 : vector<8x128xf32>
    %25 = vector.extract_strided_slice %9 {offsets = [0, 0], sizes = [8, 32], strides = [1, 1]} : vector<8x64xf32> to vector<8x32xf32>
    %26 = vector.extract_strided_slice %18 {offsets = [0, 0], sizes = [8, 96], strides = [1, 1]} : vector<8x128xf32> to vector<8x96xf32>
    %27 = arith.negf %26 : vector<8x96xf32>
    %28 = math.exp %27 : vector<8x96xf32>
    %cst_17 = arith.constant 1.000000e+00 : f32
    %29 = vector.broadcast %cst_17 : f32 to vector<8x96xf32>
    %30 = arith.addf %29, %28 : vector<8x96xf32>
    %31 = arith.divf %29, %30 : vector<8x96xf32>
    %32 = vector.extract_strided_slice %18 {offsets = [0, 96], sizes = [8, 32], strides = [1, 1]} : vector<8x128xf32> to vector<8x32xf32>
    %33 = math.tanh %32 : vector<8x32xf32>
    %34 = vector.extract_strided_slice %31 {offsets = [0, 32], sizes = [8, 32], strides = [1, 1]} : vector<8x96xf32> to vector<8x32xf32>
    %35 = arith.mulf %34, %25 : vector<8x32xf32>
    %36 = vector.extract_strided_slice %31 {offsets = [0, 0], sizes = [8, 32], strides = [1, 1]} : vector<8x96xf32> to vector<8x32xf32>
    %37 = arith.mulf %36, %33 : vector<8x32xf32>
    %38 = arith.addf %35, %37 : vector<8x32xf32>
    %39 = vector.extract_strided_slice %31 {offsets = [0, 64], sizes = [8, 32], strides = [1, 1]} : vector<8x96xf32> to vector<8x32xf32>
    %40 = math.tanh %38 : vector<8x32xf32>
    %41 = arith.mulf %39, %40 : vector<8x32xf32>
    %42 = vector.extract_strided_slice %9 {offsets = [0, 32], sizes = [8, 32], strides = [1, 1]} : vector<8x64xf32> to vector<8x32xf32>
    %43 = vector.extract_strided_slice %24 {offsets = [0, 0], sizes = [8, 96], strides = [1, 1]} : vector<8x128xf32> to vector<8x96xf32>
    %44 = arith.negf %43 : vector<8x96xf32>
    %45 = math.exp %44 : vector<8x96xf32>
    %cst_18 = arith.constant 1.000000e+00 : f32
    %46 = vector.broadcast %cst_18 : f32 to vector<8x96xf32>
    %47 = arith.addf %46, %45 : vector<8x96xf32>
    %48 = arith.divf %46, %47 : vector<8x96xf32>
    %49 = vector.extract_strided_slice %24 {offsets = [0, 96], sizes = [8, 32], strides = [1, 1]} : vector<8x128xf32> to vector<8x32xf32>
    %50 = math.tanh %49 : vector<8x32xf32>
    %51 = vector.extract_strided_slice %48 {offsets = [0, 32], sizes = [8, 32], strides = [1, 1]} : vector<8x96xf32> to vector<8x32xf32>
    %52 = arith.mulf %51, %42 : vector<8x32xf32>
    %53 = vector.extract_strided_slice %48 {offsets = [0, 0], sizes = [8, 32], strides = [1, 1]} : vector<8x96xf32> to vector<8x32xf32>
    %54 = arith.mulf %53, %50 : vector<8x32xf32>
    %55 = arith.addf %52, %54 : vector<8x32xf32>
    %56 = vector.extract_strided_slice %48 {offsets = [0, 64], sizes = [8, 32], strides = [1, 1]} : vector<8x96xf32> to vector<8x32xf32>
    %57 = math.tanh %55 : vector<8x32xf32>
    %58 = arith.mulf %56, %57 : vector<8x32xf32>
    %59 = arith.index_cast %c0_i32 : i32 to index
    %c0_19 = arith.constant 0 : index
    %c0_20 = arith.constant 0 : index
    %60 = vector.load %arg10[%59, %c0_19, %c0_20] : memref<8x8x32xf32, #tpu.memory_space<vmem>>, vector<1x8x32xf32>
    %61 = vector.shape_cast %60 : vector<1x8x32xf32> to vector<8x32xf32>
    %62 = vector.shape_cast %41 : vector<8x32xf32> to vector<1x8x32xf32>
    tpu.vector_store %arg10[%59, %c0_19, %c0_20], %62 {strides = array<i32>} : memref<8x8x32xf32, #tpu.memory_space<vmem>>, vector<1x8x32xf32>,
    %63 = arith.index_cast %10 : i32 to index
    %c0_21 = arith.constant 0 : index
    %c0_22 = arith.constant 0 : index
    %64 = vector.load %arg11[%63, %c0_21, %c0_22] : memref<8x8x32xf32, #tpu.memory_space<vmem>>, vector<1x8x32xf32>
    %65 = vector.shape_cast %64 : vector<1x8x32xf32> to vector<8x32xf32>
    %66 = vector.shape_cast %58 : vector<8x32xf32> to vector<1x8x32xf32>
    tpu.vector_store %arg11[%63, %c0_21, %c0_22], %66 {strides = array<i32>} : memref<8x8x32xf32, #tpu.memory_space<vmem>>, vector<1x8x32xf32>,
    %67 = tpu.concatenate %41, %58 in 1 : vector<8x32xf32>, vector<8x32xf32> -> vector<8x64xf32>
    %68 = tpu.concatenate %38, %55 in 1 : vector<8x32xf32>, vector<8x32xf32> -> vector<8x64xf32>
    %c1_i32 = arith.constant 1 : i32
    %c7_i32_23 = arith.constant 7 : i32
    %69 = arith.subi %c7_i32_23, %c1_i32 : i32
    %c0_24 = arith.constant 0 : index
    %c0_25 = arith.constant 0 : index
    %70 = vector.load %arg4[%c0_24, %c0_25] : memref<64x256xf32, #tpu.memory_space<vmem>>, vector<64x256xf32>
    %cst_26 = arith.constant dense<0.000000e+00> : vector<8x256xf32>
    %71 = tpu.matmul %67, %70, %cst_26 {dimension_numbers = #tpu.dot_dimension_numbers<[1], [0], [0], [1], [0, 0, 1, 1], [], []>} : vector<8x64xf32>, vector<64x256xf32>, vector<8x256xf32> -> vector<8x256xf32>
    %72 = arith.index_cast %c1_i32 : i32 to index
    %c0_27 = arith.constant 0 : index
    %c0_28 = arith.constant 0 : index
    %73 = vector.load %arg9[%72, %c0_27, %c0_28] : memref<8x8x256xf32, #tpu.memory_space<vmem>>, vector<1x8x256xf32>
    %74 = vector.shape_cast %73 : vector<1x8x256xf32> to vector<8x256xf32>
    %75 = vector.extract_strided_slice %74 {offsets = [0, 0], sizes = [8, 128], strides = [1, 1]} : vector<8x256xf32> to vector<8x128xf32>
    %76 = vector.extract_strided_slice %71 {offsets = [0, 0], sizes = [8, 128], strides = [1, 1]} : vector<8x256xf32> to vector<8x128xf32>
    %77 = arith.addf %75, %76 : vector<8x128xf32>
    %78 = arith.index_cast %69 : i32 to index
    %c0_29 = arith.constant 0 : index
    %c0_30 = arith.constant 0 : index
    %79 = vector.load %arg9[%78, %c0_29, %c0_30] : memref<8x8x256xf32, #tpu.memory_space<vmem>>, vector<1x8x256xf32>
    %80 = vector.shape_cast %79 : vector<1x8x256xf32> to vector<8x256xf32>
    %81 = vector.extract_strided_slice %80 {offsets = [0, 128], sizes = [8, 128], strides = [1, 1]} : vector<8x256xf32> to vector<8x128xf32>
    %82 = vector.extract_strided_slice %71 {offsets = [0, 128], sizes = [8, 128], strides = [1, 1]} : vector<8x256xf32> to vector<8x128xf32>
    %83 = arith.addf %81, %82 : vector<8x128xf32>
    %84 = vector.extract_strided_slice %68 {offsets = [0, 0], sizes = [8, 32], strides = [1, 1]} : vector<8x64xf32> to vector<8x32xf32>
    %85 = vector.extract_strided_slice %77 {offsets = [0, 0], sizes = [8, 96], strides = [1, 1]} : vector<8x128xf32> to vector<8x96xf32>
    %86 = arith.negf %85 : vector<8x96xf32>
    %87 = math.exp %86 : vector<8x96xf32>
    %cst_31 = arith.constant 1.000000e+00 : f32
    %88 = vector.broadcast %cst_31 : f32 to vector<8x96xf32>
    %89 = arith.addf %88, %87 : vector<8x96xf32>
    %90 = arith.divf %88, %89 : vector<8x96xf32>
    %91 = vector.extract_strided_slice %77 {offsets = [0, 96], sizes = [8, 32], strides = [1, 1]} : vector<8x128xf32> to vector<8x32xf32>
    %92 = math.tanh %91 : vector<8x32xf32>
    %93 = vector.extract_strided_slice %90 {offsets = [0, 32], sizes = [8, 32], strides = [1, 1]} : vector<8x96xf32> to vector<8x32xf32>
    %94 = arith.mulf %93, %84 : vector<8x32xf32>
    %95 = vector.extract_strided_slice %90 {offsets = [0, 0], sizes = [8, 32], strides = [1, 1]} : vector<8x96xf32> to vector<8x32xf32>
    %96 = arith.mulf %95, %92 : vector<8x32xf32>
    %97 = arith.addf %94, %96 : vector<8x32xf32>
    %98 = vector.extract_strided_slice %90 {offsets = [0, 64], sizes = [8, 32], strides = [1, 1]} : vector<8x96xf32> to vector<8x32xf32>
    %99 = math.tanh %97 : vector<8x32xf32>
    %100 = arith.mulf %98, %99 : vector<8x32xf32>
    %101 = vector.extract_strided_slice %68 {offsets = [0, 32], sizes = [8, 32], strides = [1, 1]} : vector<8x64xf32> to vector<8x32xf32>
    %102 = vector.extract_strided_slice %83 {offsets = [0, 0], sizes = [8, 96], strides = [1, 1]} : vector<8x128xf32> to vector<8x96xf32>
    %103 = arith.negf %102 : vector<8x96xf32>
    %104 = math.exp %103 : vector<8x96xf32>
    %cst_32 = arith.constant 1.000000e+00 : f32
    %105 = vector.broadcast %cst_32 : f32 to vector<8x96xf32>
    %106 = arith.addf %105, %104 : vector<8x96xf32>
    %107 = arith.divf %105, %106 : vector<8x96xf32>
    %108 = vector.extract_strided_slice %83 {offsets = [0, 96], sizes = [8, 32], strides = [1, 1]} : vector<8x128xf32> to vector<8x32xf32>
    %109 = math.tanh %108 : vector<8x32xf32>
    %110 = vector.extract_strided_slice %107 {offsets = [0, 32], sizes = [8, 32], strides = [1, 1]} : vector<8x96xf32> to vector<8x32xf32>
    %111 = arith.mulf %110, %101 : vector<8x32xf32>
    %112 = vector.extract_strided_slice %107 {offsets = [0, 0], sizes = [8, 32], strides = [1, 1]} : vector<8x96xf32> to vector<8x32xf32>
    %113 = arith.mulf %112, %109 : vector<8x32xf32>
    %114 = arith.addf %111, %113 : vector<8x32xf32>
    %115 = vector.extract_strided_slice %107 {offsets = [0, 64], sizes = [8, 32], strides = [1, 1]} : vector<8x96xf32> to vector<8x32xf32>
    %116 = math.tanh %114 : vector<8x32xf32>
    %117 = arith.mulf %115, %116 : vector<8x32xf32>
    %118 = arith.index_cast %c1_i32 : i32 to index
    %c0_33 = arith.constant 0 : index
    %c0_34 = arith.constant 0 : index
    %119 = vector.load %arg10[%118, %c0_33, %c0_34] : memref<8x8x32xf32, #tpu.memory_space<vmem>>, vector<1x8x32xf32>
    %120 = vector.shape_cast %119 : vector<1x8x32xf32> to vector<8x32xf32>
    %121 = vector.shape_cast %100 : vector<8x32xf32> to vector<1x8x32xf32>
    tpu.vector_store %arg10[%118, %c0_33, %c0_34], %121 {strides = array<i32>} : memref<8x8x32xf32, #tpu.memory_space<vmem>>, vector<1x8x32xf32>,
    %122 = arith.index_cast %69 : i32 to index
    %c0_35 = arith.constant 0 : index
    %c0_36 = arith.constant 0 : index
    %123 = vector.load %arg11[%122, %c0_35, %c0_36] : memref<8x8x32xf32, #tpu.memory_space<vmem>>, vector<1x8x32xf32>
    %124 = vector.shape_cast %123 : vector<1x8x32xf32> to vector<8x32xf32>
    %125 = vector.shape_cast %117 : vector<8x32xf32> to vector<1x8x32xf32>
    tpu.vector_store %arg11[%122, %c0_35, %c0_36], %125 {strides = array<i32>} : memref<8x8x32xf32, #tpu.memory_space<vmem>>, vector<1x8x32xf32>,
    %126 = tpu.concatenate %100, %117 in 1 : vector<8x32xf32>, vector<8x32xf32> -> vector<8x64xf32>
    %127 = tpu.concatenate %97, %114 in 1 : vector<8x32xf32>, vector<8x32xf32> -> vector<8x64xf32>
    %c2_i32 = arith.constant 2 : i32
    %c7_i32_37 = arith.constant 7 : i32
    %128 = arith.subi %c7_i32_37, %c2_i32 : i32
    %c0_38 = arith.constant 0 : index
    %c0_39 = arith.constant 0 : index
    %129 = vector.load %arg4[%c0_38, %c0_39] : memref<64x256xf32, #tpu.memory_space<vmem>>, vector<64x256xf32>
    %cst_40 = arith.constant dense<0.000000e+00> : vector<8x256xf32>
    %130 = tpu.matmul %126, %129, %cst_40 {dimension_numbers = #tpu.dot_dimension_numbers<[1], [0], [0], [1], [0, 0, 1, 1], [], []>} : vector<8x64xf32>, vector<64x256xf32>, vector<8x256xf32> -> vector<8x256xf32>
    %131 = arith.index_cast %c2_i32 : i32 to index
    %c0_41 = arith.constant 0 : index
    %c0_42 = arith.constant 0 : index
    %132 = vector.load %arg9[%131, %c0_41, %c0_42] : memref<8x8x256xf32, #tpu.memory_space<vmem>>, vector<1x8x256xf32>
    %133 = vector.shape_cast %132 : vector<1x8x256xf32> to vector<8x256xf32>
    %134 = vector.extract_strided_slice %133 {offsets = [0, 0], sizes = [8, 128], strides = [1, 1]} : vector<8x256xf32> to vector<8x128xf32>
    %135 = vector.extract_strided_slice %130 {offsets = [0, 0], sizes = [8, 128], strides = [1, 1]} : vector<8x256xf32> to vector<8x128xf32>
    %136 = arith.addf %134, %135 : vector<8x128xf32>
    %137 = arith.index_cast %128 : i32 to index
    %c0_43 = arith.constant 0 : index
    %c0_44 = arith.constant 0 : index
    %138 = vector.load %arg9[%137, %c0_43, %c0_44] : memref<8x8x256xf32, #tpu.memory_space<vmem>>, vector<1x8x256xf32>
    %139 = vector.shape_cast %138 : vector<1x8x256xf32> to vector<8x256xf32>
    %140 = vector.extract_strided_slice %139 {offsets = [0, 128], sizes = [8, 128], strides = [1, 1]} : vector<8x256xf32> to vector<8x128xf32>
    %141 = vector.extract_strided_slice %130 {offsets = [0, 128], sizes = [8, 128], strides = [1, 1]} : vector<8x256xf32> to vector<8x128xf32>
    %142 = arith.addf %140, %141 : vector<8x128xf32>
    %143 = vector.extract_strided_slice %127 {offsets = [0, 0], sizes = [8, 32], strides = [1, 1]} : vector<8x64xf32> to vector<8x32xf32>
    %144 = vector.extract_strided_slice %136 {offsets = [0, 0], sizes = [8, 96], strides = [1, 1]} : vector<8x128xf32> to vector<8x96xf32>
    %145 = arith.negf %144 : vector<8x96xf32>
    %146 = math.exp %145 : vector<8x96xf32>
    %cst_45 = arith.constant 1.000000e+00 : f32
    %147 = vector.broadcast %cst_45 : f32 to vector<8x96xf32>
    %148 = arith.addf %147, %146 : vector<8x96xf32>
    %149 = arith.divf %147, %148 : vector<8x96xf32>
    %150 = vector.extract_strided_slice %136 {offsets = [0, 96], sizes = [8, 32], strides = [1, 1]} : vector<8x128xf32> to vector<8x32xf32>
    %151 = math.tanh %150 : vector<8x32xf32>
    %152 = vector.extract_strided_slice %149 {offsets = [0, 32], sizes = [8, 32], strides = [1, 1]} : vector<8x96xf32> to vector<8x32xf32>
    %153 = arith.mulf %152, %143 : vector<8x32xf32>
    %154 = vector.extract_strided_slice %149 {offsets = [0, 0], sizes = [8, 32], strides = [1, 1]} : vector<8x96xf32> to vector<8x32xf32>
    %155 = arith.mulf %154, %151 : vector<8x32xf32>
    %156 = arith.addf %153, %155 : vector<8x32xf32>
    %157 = vector.extract_strided_slice %149 {offsets = [0, 64], sizes = [8, 32], strides = [1, 1]} : vector<8x96xf32> to vector<8x32xf32>
    %158 = math.tanh %156 : vector<8x32xf32>
    %159 = arith.mulf %157, %158 : vector<8x32xf32>
    %160 = vector.extract_strided_slice %127 {offsets = [0, 32], sizes = [8, 32], strides = [1, 1]} : vector<8x64xf32> to vector<8x32xf32>
    %161 = vector.extract_strided_slice %142 {offsets = [0, 0], sizes = [8, 96], strides = [1, 1]} : vector<8x128xf32> to vector<8x96xf32>
    %162 = arith.negf %161 : vector<8x96xf32>
    %163 = math.exp %162 : vector<8x96xf32>
    %cst_46 = arith.constant 1.000000e+00 : f32
    %164 = vector.broadcast %cst_46 : f32 to vector<8x96xf32>
    %165 = arith.addf %164, %163 : vector<8x96xf32>
    %166 = arith.divf %164, %165 : vector<8x96xf32>
    %167 = vector.extract_strided_slice %142 {offsets = [0, 96], sizes = [8, 32], strides = [1, 1]} : vector<8x128xf32> to vector<8x32xf32>
    %168 = math.tanh %167 : vector<8x32xf32>
    %169 = vector.extract_strided_slice %166 {offsets = [0, 32], sizes = [8, 32], strides = [1, 1]} : vector<8x96xf32> to vector<8x32xf32>
    %170 = arith.mulf %169, %160 : vector<8x32xf32>
    %171 = vector.extract_strided_slice %166 {offsets = [0, 0], sizes = [8, 32], strides = [1, 1]} : vector<8x96xf32> to vector<8x32xf32>
    %172 = arith.mulf %171, %168 : vector<8x32xf32>
    %173 = arith.addf %170, %172 : vector<8x32xf32>
    %174 = vector.extract_strided_slice %166 {offsets = [0, 64], sizes = [8, 32], strides = [1, 1]} : vector<8x96xf32> to vector<8x32xf32>
    %175 = math.tanh %173 : vector<8x32xf32>
    %176 = arith.mulf %174, %175 : vector<8x32xf32>
    %177 = arith.index_cast %c2_i32 : i32 to index
    %c0_47 = arith.constant 0 : index
    %c0_48 = arith.constant 0 : index
    %178 = vector.load %arg10[%177, %c0_47, %c0_48] : memref<8x8x32xf32, #tpu.memory_space<vmem>>, vector<1x8x32xf32>
    %179 = vector.shape_cast %178 : vector<1x8x32xf32> to vector<8x32xf32>
    %180 = vector.shape_cast %159 : vector<8x32xf32> to vector<1x8x32xf32>
    tpu.vector_store %arg10[%177, %c0_47, %c0_48], %180 {strides = array<i32>} : memref<8x8x32xf32, #tpu.memory_space<vmem>>, vector<1x8x32xf32>,
    %181 = arith.index_cast %128 : i32 to index
    %c0_49 = arith.constant 0 : index
    %c0_50 = arith.constant 0 : index
    %182 = vector.load %arg11[%181, %c0_49, %c0_50] : memref<8x8x32xf32, #tpu.memory_space<vmem>>, vector<1x8x32xf32>
    %183 = vector.shape_cast %182 : vector<1x8x32xf32> to vector<8x32xf32>
    %184 = vector.shape_cast %176 : vector<8x32xf32> to vector<1x8x32xf32>
    tpu.vector_store %arg11[%181, %c0_49, %c0_50], %184 {strides = array<i32>} : memref<8x8x32xf32, #tpu.memory_space<vmem>>, vector<1x8x32xf32>,
    %185 = tpu.concatenate %159, %176 in 1 : vector<8x32xf32>, vector<8x32xf32> -> vector<8x64xf32>
    %186 = tpu.concatenate %156, %173 in 1 : vector<8x32xf32>, vector<8x32xf32> -> vector<8x64xf32>
    %c3_i32 = arith.constant 3 : i32
    %c7_i32_51 = arith.constant 7 : i32
    %187 = arith.subi %c7_i32_51, %c3_i32 : i32
    %c0_52 = arith.constant 0 : index
    %c0_53 = arith.constant 0 : index
    %188 = vector.load %arg4[%c0_52, %c0_53] : memref<64x256xf32, #tpu.memory_space<vmem>>, vector<64x256xf32>
    %cst_54 = arith.constant dense<0.000000e+00> : vector<8x256xf32>
    %189 = tpu.matmul %185, %188, %cst_54 {dimension_numbers = #tpu.dot_dimension_numbers<[1], [0], [0], [1], [0, 0, 1, 1], [], []>} : vector<8x64xf32>, vector<64x256xf32>, vector<8x256xf32> -> vector<8x256xf32>
    %190 = arith.index_cast %c3_i32 : i32 to index
    %c0_55 = arith.constant 0 : index
    %c0_56 = arith.constant 0 : index
    %191 = vector.load %arg9[%190, %c0_55, %c0_56] : memref<8x8x256xf32, #tpu.memory_space<vmem>>, vector<1x8x256xf32>
    %192 = vector.shape_cast %191 : vector<1x8x256xf32> to vector<8x256xf32>
    %193 = vector.extract_strided_slice %192 {offsets = [0, 0], sizes = [8, 128], strides = [1, 1]} : vector<8x256xf32> to vector<8x128xf32>
    %194 = vector.extract_strided_slice %189 {offsets = [0, 0], sizes = [8, 128], strides = [1, 1]} : vector<8x256xf32> to vector<8x128xf32>
    %195 = arith.addf %193, %194 : vector<8x128xf32>
    %196 = arith.index_cast %187 : i32 to index
    %c0_57 = arith.constant 0 : index
    %c0_58 = arith.constant 0 : index
    %197 = vector.load %arg9[%196, %c0_57, %c0_58] : memref<8x8x256xf32, #tpu.memory_space<vmem>>, vector<1x8x256xf32>
    %198 = vector.shape_cast %197 : vector<1x8x256xf32> to vector<8x256xf32>
    %199 = vector.extract_strided_slice %198 {offsets = [0, 128], sizes = [8, 128], strides = [1, 1]} : vector<8x256xf32> to vector<8x128xf32>
    %200 = vector.extract_strided_slice %189 {offsets = [0, 128], sizes = [8, 128], strides = [1, 1]} : vector<8x256xf32> to vector<8x128xf32>
    %201 = arith.addf %199, %200 : vector<8x128xf32>
    %202 = vector.extract_strided_slice %186 {offsets = [0, 0], sizes = [8, 32], strides = [1, 1]} : vector<8x64xf32> to vector<8x32xf32>
    %203 = vector.extract_strided_slice %195 {offsets = [0, 0], sizes = [8, 96], strides = [1, 1]} : vector<8x128xf32> to vector<8x96xf32>
    %204 = arith.negf %203 : vector<8x96xf32>
    %205 = math.exp %204 : vector<8x96xf32>
    %cst_59 = arith.constant 1.000000e+00 : f32
    %206 = vector.broadcast %cst_59 : f32 to vector<8x96xf32>
    %207 = arith.addf %206, %205 : vector<8x96xf32>
    %208 = arith.divf %206, %207 : vector<8x96xf32>
    %209 = vector.extract_strided_slice %195 {offsets = [0, 96], sizes = [8, 32], strides = [1, 1]} : vector<8x128xf32> to vector<8x32xf32>
    %210 = math.tanh %209 : vector<8x32xf32>
    %211 = vector.extract_strided_slice %208 {offsets = [0, 32], sizes = [8, 32], strides = [1, 1]} : vector<8x96xf32> to vector<8x32xf32>
    %212 = arith.mulf %211, %202 : vector<8x32xf32>
    %213 = vector.extract_strided_slice %208 {offsets = [0, 0], sizes = [8, 32], strides = [1, 1]} : vector<8x96xf32> to vector<8x32xf32>
    %214 = arith.mulf %213, %210 : vector<8x32xf32>
    %215 = arith.addf %212, %214 : vector<8x32xf32>
    %216 = vector.extract_strided_slice %208 {offsets = [0, 64], sizes = [8, 32], strides = [1, 1]} : vector<8x96xf32> to vector<8x32xf32>
    %217 = math.tanh %215 : vector<8x32xf32>
    %218 = arith.mulf %216, %217 : vector<8x32xf32>
    %219 = vector.extract_strided_slice %186 {offsets = [0, 32], sizes = [8, 32], strides = [1, 1]} : vector<8x64xf32> to vector<8x32xf32>
    %220 = vector.extract_strided_slice %201 {offsets = [0, 0], sizes = [8, 96], strides = [1, 1]} : vector<8x128xf32> to vector<8x96xf32>
    %221 = arith.negf %220 : vector<8x96xf32>
    %222 = math.exp %221 : vector<8x96xf32>
    %cst_60 = arith.constant 1.000000e+00 : f32
    %223 = vector.broadcast %cst_60 : f32 to vector<8x96xf32>
    %224 = arith.addf %223, %222 : vector<8x96xf32>
    %225 = arith.divf %223, %224 : vector<8x96xf32>
    %226 = vector.extract_strided_slice %201 {offsets = [0, 96], sizes = [8, 32], strides = [1, 1]} : vector<8x128xf32> to vector<8x32xf32>
    %227 = math.tanh %226 : vector<8x32xf32>
    %228 = vector.extract_strided_slice %225 {offsets = [0, 32], sizes = [8, 32], strides = [1, 1]} : vector<8x96xf32> to vector<8x32xf32>
    %229 = arith.mulf %228, %219 : vector<8x32xf32>
    %230 = vector.extract_strided_slice %225 {offsets = [0, 0], sizes = [8, 32], strides = [1, 1]} : vector<8x96xf32> to vector<8x32xf32>
    %231 = arith.mulf %230, %227 : vector<8x32xf32>
    %232 = arith.addf %229, %231 : vector<8x32xf32>
    %233 = vector.extract_strided_slice %225 {offsets = [0, 64], sizes = [8, 32], strides = [1, 1]} : vector<8x96xf32> to vector<8x32xf32>
    %234 = math.tanh %232 : vector<8x32xf32>
    %235 = arith.mulf %233, %234 : vector<8x32xf32>
    %236 = arith.index_cast %c3_i32 : i32 to index
    %c0_61 = arith.constant 0 : index
    %c0_62 = arith.constant 0 : index
    %237 = vector.load %arg10[%236, %c0_61, %c0_62] : memref<8x8x32xf32, #tpu.memory_space<vmem>>, vector<1x8x32xf32>
    %238 = vector.shape_cast %237 : vector<1x8x32xf32> to vector<8x32xf32>
    %239 = vector.shape_cast %218 : vector<8x32xf32> to vector<1x8x32xf32>
    tpu.vector_store %arg10[%236, %c0_61, %c0_62], %239 {strides = array<i32>} : memref<8x8x32xf32, #tpu.memory_space<vmem>>, vector<1x8x32xf32>,
    %240 = arith.index_cast %187 : i32 to index
    %c0_63 = arith.constant 0 : index
    %c0_64 = arith.constant 0 : index
    %241 = vector.load %arg11[%240, %c0_63, %c0_64] : memref<8x8x32xf32, #tpu.memory_space<vmem>>, vector<1x8x32xf32>
    %242 = vector.shape_cast %241 : vector<1x8x32xf32> to vector<8x32xf32>
    %243 = vector.shape_cast %235 : vector<8x32xf32> to vector<1x8x32xf32>
    tpu.vector_store %arg11[%240, %c0_63, %c0_64], %243 {strides = array<i32>} : memref<8x8x32xf32, #tpu.memory_space<vmem>>, vector<1x8x32xf32>,
    %244 = tpu.concatenate %218, %235 in 1 : vector<8x32xf32>, vector<8x32xf32> -> vector<8x64xf32>
    %245 = tpu.concatenate %215, %232 in 1 : vector<8x32xf32>, vector<8x32xf32> -> vector<8x64xf32>
    %c4_i32 = arith.constant 4 : i32
    %c7_i32_65 = arith.constant 7 : i32
    %246 = arith.subi %c7_i32_65, %c4_i32 : i32
    %c0_66 = arith.constant 0 : index
    %c0_67 = arith.constant 0 : index
    %247 = vector.load %arg4[%c0_66, %c0_67] : memref<64x256xf32, #tpu.memory_space<vmem>>, vector<64x256xf32>
    %cst_68 = arith.constant dense<0.000000e+00> : vector<8x256xf32>
    %248 = tpu.matmul %244, %247, %cst_68 {dimension_numbers = #tpu.dot_dimension_numbers<[1], [0], [0], [1], [0, 0, 1, 1], [], []>} : vector<8x64xf32>, vector<64x256xf32>, vector<8x256xf32> -> vector<8x256xf32>
    %249 = arith.index_cast %c4_i32 : i32 to index
    %c0_69 = arith.constant 0 : index
    %c0_70 = arith.constant 0 : index
    %250 = vector.load %arg9[%249, %c0_69, %c0_70] : memref<8x8x256xf32, #tpu.memory_space<vmem>>, vector<1x8x256xf32>
    %251 = vector.shape_cast %250 : vector<1x8x256xf32> to vector<8x256xf32>
    %252 = vector.extract_strided_slice %251 {offsets = [0, 0], sizes = [8, 128], strides = [1, 1]} : vector<8x256xf32> to vector<8x128xf32>
    %253 = vector.extract_strided_slice %248 {offsets = [0, 0], sizes = [8, 128], strides = [1, 1]} : vector<8x256xf32> to vector<8x128xf32>
    %254 = arith.addf %252, %253 : vector<8x128xf32>
    %255 = arith.index_cast %246 : i32 to index
    %c0_71 = arith.constant 0 : index
    %c0_72 = arith.constant 0 : index
    %256 = vector.load %arg9[%255, %c0_71, %c0_72] : memref<8x8x256xf32, #tpu.memory_space<vmem>>, vector<1x8x256xf32>
    %257 = vector.shape_cast %256 : vector<1x8x256xf32> to vector<8x256xf32>
    %258 = vector.extract_strided_slice %257 {offsets = [0, 128], sizes = [8, 128], strides = [1, 1]} : vector<8x256xf32> to vector<8x128xf32>
    %259 = vector.extract_strided_slice %248 {offsets = [0, 128], sizes = [8, 128], strides = [1, 1]} : vector<8x256xf32> to vector<8x128xf32>
    %260 = arith.addf %258, %259 : vector<8x128xf32>
    %261 = vector.extract_strided_slice %245 {offsets = [0, 0], sizes = [8, 32], strides = [1, 1]} : vector<8x64xf32> to vector<8x32xf32>
    %262 = vector.extract_strided_slice %254 {offsets = [0, 0], sizes = [8, 96], strides = [1, 1]} : vector<8x128xf32> to vector<8x96xf32>
    %263 = arith.negf %262 : vector<8x96xf32>
    %264 = math.exp %263 : vector<8x96xf32>
    %cst_73 = arith.constant 1.000000e+00 : f32
    %265 = vector.broadcast %cst_73 : f32 to vector<8x96xf32>
    %266 = arith.addf %265, %264 : vector<8x96xf32>
    %267 = arith.divf %265, %266 : vector<8x96xf32>
    %268 = vector.extract_strided_slice %254 {offsets = [0, 96], sizes = [8, 32], strides = [1, 1]} : vector<8x128xf32> to vector<8x32xf32>
    %269 = math.tanh %268 : vector<8x32xf32>
    %270 = vector.extract_strided_slice %267 {offsets = [0, 32], sizes = [8, 32], strides = [1, 1]} : vector<8x96xf32> to vector<8x32xf32>
    %271 = arith.mulf %270, %261 : vector<8x32xf32>
    %272 = vector.extract_strided_slice %267 {offsets = [0, 0], sizes = [8, 32], strides = [1, 1]} : vector<8x96xf32> to vector<8x32xf32>
    %273 = arith.mulf %272, %269 : vector<8x32xf32>
    %274 = arith.addf %271, %273 : vector<8x32xf32>
    %275 = vector.extract_strided_slice %267 {offsets = [0, 64], sizes = [8, 32], strides = [1, 1]} : vector<8x96xf32> to vector<8x32xf32>
    %276 = math.tanh %274 : vector<8x32xf32>
    %277 = arith.mulf %275, %276 : vector<8x32xf32>
    %278 = vector.extract_strided_slice %245 {offsets = [0, 32], sizes = [8, 32], strides = [1, 1]} : vector<8x64xf32> to vector<8x32xf32>
    %279 = vector.extract_strided_slice %260 {offsets = [0, 0], sizes = [8, 96], strides = [1, 1]} : vector<8x128xf32> to vector<8x96xf32>
    %280 = arith.negf %279 : vector<8x96xf32>
    %281 = math.exp %280 : vector<8x96xf32>
    %cst_74 = arith.constant 1.000000e+00 : f32
    %282 = vector.broadcast %cst_74 : f32 to vector<8x96xf32>
    %283 = arith.addf %282, %281 : vector<8x96xf32>
    %284 = arith.divf %282, %283 : vector<8x96xf32>
    %285 = vector.extract_strided_slice %260 {offsets = [0, 96], sizes = [8, 32], strides = [1, 1]} : vector<8x128xf32> to vector<8x32xf32>
    %286 = math.tanh %285 : vector<8x32xf32>
    %287 = vector.extract_strided_slice %284 {offsets = [0, 32], sizes = [8, 32], strides = [1, 1]} : vector<8x96xf32> to vector<8x32xf32>
    %288 = arith.mulf %287, %278 : vector<8x32xf32>
    %289 = vector.extract_strided_slice %284 {offsets = [0, 0], sizes = [8, 32], strides = [1, 1]} : vector<8x96xf32> to vector<8x32xf32>
    %290 = arith.mulf %289, %286 : vector<8x32xf32>
    %291 = arith.addf %288, %290 : vector<8x32xf32>
    %292 = vector.extract_strided_slice %284 {offsets = [0, 64], sizes = [8, 32], strides = [1, 1]} : vector<8x96xf32> to vector<8x32xf32>
    %293 = math.tanh %291 : vector<8x32xf32>
    %294 = arith.mulf %292, %293 : vector<8x32xf32>
    %295 = arith.index_cast %c4_i32 : i32 to index
    %c0_75 = arith.constant 0 : index
    %c0_76 = arith.constant 0 : index
    %296 = vector.load %arg10[%295, %c0_75, %c0_76] : memref<8x8x32xf32, #tpu.memory_space<vmem>>, vector<1x8x32xf32>
    %297 = vector.shape_cast %296 : vector<1x8x32xf32> to vector<8x32xf32>
    %298 = vector.shape_cast %277 : vector<8x32xf32> to vector<1x8x32xf32>
    tpu.vector_store %arg10[%295, %c0_75, %c0_76], %298 {strides = array<i32>} : memref<8x8x32xf32, #tpu.memory_space<vmem>>, vector<1x8x32xf32>,
    %299 = arith.index_cast %246 : i32 to index
    %c0_77 = arith.constant 0 : index
    %c0_78 = arith.constant 0 : index
    %300 = vector.load %arg11[%299, %c0_77, %c0_78] : memref<8x8x32xf32, #tpu.memory_space<vmem>>, vector<1x8x32xf32>
    %301 = vector.shape_cast %300 : vector<1x8x32xf32> to vector<8x32xf32>
    %302 = vector.shape_cast %294 : vector<8x32xf32> to vector<1x8x32xf32>
    tpu.vector_store %arg11[%299, %c0_77, %c0_78], %302 {strides = array<i32>} : memref<8x8x32xf32, #tpu.memory_space<vmem>>, vector<1x8x32xf32>,
    %303 = tpu.concatenate %277, %294 in 1 : vector<8x32xf32>, vector<8x32xf32> -> vector<8x64xf32>
    %304 = tpu.concatenate %274, %291 in 1 : vector<8x32xf32>, vector<8x32xf32> -> vector<8x64xf32>
    %c5_i32 = arith.constant 5 : i32
    %c7_i32_79 = arith.constant 7 : i32
    %305 = arith.subi %c7_i32_79, %c5_i32 : i32
    %c0_80 = arith.constant 0 : index
    %c0_81 = arith.constant 0 : index
    %306 = vector.load %arg4[%c0_80, %c0_81] : memref<64x256xf32, #tpu.memory_space<vmem>>, vector<64x256xf32>
    %cst_82 = arith.constant dense<0.000000e+00> : vector<8x256xf32>
    %307 = tpu.matmul %303, %306, %cst_82 {dimension_numbers = #tpu.dot_dimension_numbers<[1], [0], [0], [1], [0, 0, 1, 1], [], []>} : vector<8x64xf32>, vector<64x256xf32>, vector<8x256xf32> -> vector<8x256xf32>
    %308 = arith.index_cast %c5_i32 : i32 to index
    %c0_83 = arith.constant 0 : index
    %c0_84 = arith.constant 0 : index
    %309 = vector.load %arg9[%308, %c0_83, %c0_84] : memref<8x8x256xf32, #tpu.memory_space<vmem>>, vector<1x8x256xf32>
    %310 = vector.shape_cast %309 : vector<1x8x256xf32> to vector<8x256xf32>
    %311 = vector.extract_strided_slice %310 {offsets = [0, 0], sizes = [8, 128], strides = [1, 1]} : vector<8x256xf32> to vector<8x128xf32>
    %312 = vector.extract_strided_slice %307 {offsets = [0, 0], sizes = [8, 128], strides = [1, 1]} : vector<8x256xf32> to vector<8x128xf32>
    %313 = arith.addf %311, %312 : vector<8x128xf32>
    %314 = arith.index_cast %305 : i32 to index
    %c0_85 = arith.constant 0 : index
    %c0_86 = arith.constant 0 : index
    %315 = vector.load %arg9[%314, %c0_85, %c0_86] : memref<8x8x256xf32, #tpu.memory_space<vmem>>, vector<1x8x256xf32>
    %316 = vector.shape_cast %315 : vector<1x8x256xf32> to vector<8x256xf32>
    %317 = vector.extract_strided_slice %316 {offsets = [0, 128], sizes = [8, 128], strides = [1, 1]} : vector<8x256xf32> to vector<8x128xf32>
    %318 = vector.extract_strided_slice %307 {offsets = [0, 128], sizes = [8, 128], strides = [1, 1]} : vector<8x256xf32> to vector<8x128xf32>
    %319 = arith.addf %317, %318 : vector<8x128xf32>
    %320 = vector.extract_strided_slice %304 {offsets = [0, 0], sizes = [8, 32], strides = [1, 1]} : vector<8x64xf32> to vector<8x32xf32>
    %321 = vector.extract_strided_slice %313 {offsets = [0, 0], sizes = [8, 96], strides = [1, 1]} : vector<8x128xf32> to vector<8x96xf32>
    %322 = arith.negf %321 : vector<8x96xf32>
    %323 = math.exp %322 : vector<8x96xf32>
    %cst_87 = arith.constant 1.000000e+00 : f32
    %324 = vector.broadcast %cst_87 : f32 to vector<8x96xf32>
    %325 = arith.addf %324, %323 : vector<8x96xf32>
    %326 = arith.divf %324, %325 : vector<8x96xf32>
    %327 = vector.extract_strided_slice %313 {offsets = [0, 96], sizes = [8, 32], strides = [1, 1]} : vector<8x128xf32> to vector<8x32xf32>
    %328 = math.tanh %327 : vector<8x32xf32>
    %329 = vector.extract_strided_slice %326 {offsets = [0, 32], sizes = [8, 32], strides = [1, 1]} : vector<8x96xf32> to vector<8x32xf32>
    %330 = arith.mulf %329, %320 : vector<8x32xf32>
    %331 = vector.extract_strided_slice %326 {offsets = [0, 0], sizes = [8, 32], strides = [1, 1]} : vector<8x96xf32> to vector<8x32xf32>
    %332 = arith.mulf %331, %328 : vector<8x32xf32>
    %333 = arith.addf %330, %332 : vector<8x32xf32>
    %334 = vector.extract_strided_slice %326 {offsets = [0, 64], sizes = [8, 32], strides = [1, 1]} : vector<8x96xf32> to vector<8x32xf32>
    %335 = math.tanh %333 : vector<8x32xf32>
    %336 = arith.mulf %334, %335 : vector<8x32xf32>
    %337 = vector.extract_strided_slice %304 {offsets = [0, 32], sizes = [8, 32], strides = [1, 1]} : vector<8x64xf32> to vector<8x32xf32>
    %338 = vector.extract_strided_slice %319 {offsets = [0, 0], sizes = [8, 96], strides = [1, 1]} : vector<8x128xf32> to vector<8x96xf32>
    %339 = arith.negf %338 : vector<8x96xf32>
    %340 = math.exp %339 : vector<8x96xf32>
    %cst_88 = arith.constant 1.000000e+00 : f32
    %341 = vector.broadcast %cst_88 : f32 to vector<8x96xf32>
    %342 = arith.addf %341, %340 : vector<8x96xf32>
    %343 = arith.divf %341, %342 : vector<8x96xf32>
    %344 = vector.extract_strided_slice %319 {offsets = [0, 96], sizes = [8, 32], strides = [1, 1]} : vector<8x128xf32> to vector<8x32xf32>
    %345 = math.tanh %344 : vector<8x32xf32>
    %346 = vector.extract_strided_slice %343 {offsets = [0, 32], sizes = [8, 32], strides = [1, 1]} : vector<8x96xf32> to vector<8x32xf32>
    %347 = arith.mulf %346, %337 : vector<8x32xf32>
    %348 = vector.extract_strided_slice %343 {offsets = [0, 0], sizes = [8, 32], strides = [1, 1]} : vector<8x96xf32> to vector<8x32xf32>
    %349 = arith.mulf %348, %345 : vector<8x32xf32>
    %350 = arith.addf %347, %349 : vector<8x32xf32>
    %351 = vector.extract_strided_slice %343 {offsets = [0, 64], sizes = [8, 32], strides = [1, 1]} : vector<8x96xf32> to vector<8x32xf32>
    %352 = math.tanh %350 : vector<8x32xf32>
    %353 = arith.mulf %351, %352 : vector<8x32xf32>
    %354 = arith.index_cast %c5_i32 : i32 to index
    %c0_89 = arith.constant 0 : index
    %c0_90 = arith.constant 0 : index
    %355 = vector.load %arg10[%354, %c0_89, %c0_90] : memref<8x8x32xf32, #tpu.memory_space<vmem>>, vector<1x8x32xf32>
    %356 = vector.shape_cast %355 : vector<1x8x32xf32> to vector<8x32xf32>
    %357 = vector.shape_cast %336 : vector<8x32xf32> to vector<1x8x32xf32>
    tpu.vector_store %arg10[%354, %c0_89, %c0_90], %357 {strides = array<i32>} : memref<8x8x32xf32, #tpu.memory_space<vmem>>, vector<1x8x32xf32>,
    %358 = arith.index_cast %305 : i32 to index
    %c0_91 = arith.constant 0 : index
    %c0_92 = arith.constant 0 : index
    %359 = vector.load %arg11[%358, %c0_91, %c0_92] : memref<8x8x32xf32, #tpu.memory_space<vmem>>, vector<1x8x32xf32>
    %360 = vector.shape_cast %359 : vector<1x8x32xf32> to vector<8x32xf32>
    %361 = vector.shape_cast %353 : vector<8x32xf32> to vector<1x8x32xf32>
    tpu.vector_store %arg11[%358, %c0_91, %c0_92], %361 {strides = array<i32>} : memref<8x8x32xf32, #tpu.memory_space<vmem>>, vector<1x8x32xf32>,
    %362 = tpu.concatenate %336, %353 in 1 : vector<8x32xf32>, vector<8x32xf32> -> vector<8x64xf32>
    %363 = tpu.concatenate %333, %350 in 1 : vector<8x32xf32>, vector<8x32xf32> -> vector<8x64xf32>
    %c6_i32 = arith.constant 6 : i32
    %c7_i32_93 = arith.constant 7 : i32
    %364 = arith.subi %c7_i32_93, %c6_i32 : i32
    %c0_94 = arith.constant 0 : index
    %c0_95 = arith.constant 0 : index
    %365 = vector.load %arg4[%c0_94, %c0_95] : memref<64x256xf32, #tpu.memory_space<vmem>>, vector<64x256xf32>
    %cst_96 = arith.constant dense<0.000000e+00> : vector<8x256xf32>
    %366 = tpu.matmul %362, %365, %cst_96 {dimension_numbers = #tpu.dot_dimension_numbers<[1], [0], [0], [1], [0, 0, 1, 1], [], []>} : vector<8x64xf32>, vector<64x256xf32>, vector<8x256xf32> -> vector<8x256xf32>
    %367 = arith.index_cast %c6_i32 : i32 to index
    %c0_97 = arith.constant 0 : index
    %c0_98 = arith.constant 0 : index
    %368 = vector.load %arg9[%367, %c0_97, %c0_98] : memref<8x8x256xf32, #tpu.memory_space<vmem>>, vector<1x8x256xf32>
    %369 = vector.shape_cast %368 : vector<1x8x256xf32> to vector<8x256xf32>
    %370 = vector.extract_strided_slice %369 {offsets = [0, 0], sizes = [8, 128], strides = [1, 1]} : vector<8x256xf32> to vector<8x128xf32>
    %371 = vector.extract_strided_slice %366 {offsets = [0, 0], sizes = [8, 128], strides = [1, 1]} : vector<8x256xf32> to vector<8x128xf32>
    %372 = arith.addf %370, %371 : vector<8x128xf32>
    %373 = arith.index_cast %364 : i32 to index
    %c0_99 = arith.constant 0 : index
    %c0_100 = arith.constant 0 : index
    %374 = vector.load %arg9[%373, %c0_99, %c0_100] : memref<8x8x256xf32, #tpu.memory_space<vmem>>, vector<1x8x256xf32>
    %375 = vector.shape_cast %374 : vector<1x8x256xf32> to vector<8x256xf32>
    %376 = vector.extract_strided_slice %375 {offsets = [0, 128], sizes = [8, 128], strides = [1, 1]} : vector<8x256xf32> to vector<8x128xf32>
    %377 = vector.extract_strided_slice %366 {offsets = [0, 128], sizes = [8, 128], strides = [1, 1]} : vector<8x256xf32> to vector<8x128xf32>
    %378 = arith.addf %376, %377 : vector<8x128xf32>
    %379 = vector.extract_strided_slice %363 {offsets = [0, 0], sizes = [8, 32], strides = [1, 1]} : vector<8x64xf32> to vector<8x32xf32>
    %380 = vector.extract_strided_slice %372 {offsets = [0, 0], sizes = [8, 96], strides = [1, 1]} : vector<8x128xf32> to vector<8x96xf32>
    %381 = arith.negf %380 : vector<8x96xf32>
    %382 = math.exp %381 : vector<8x96xf32>
    %cst_101 = arith.constant 1.000000e+00 : f32
    %383 = vector.broadcast %cst_101 : f32 to vector<8x96xf32>
    %384 = arith.addf %383, %382 : vector<8x96xf32>
    %385 = arith.divf %383, %384 : vector<8x96xf32>
    %386 = vector.extract_strided_slice %372 {offsets = [0, 96], sizes = [8, 32], strides = [1, 1]} : vector<8x128xf32> to vector<8x32xf32>
    %387 = math.tanh %386 : vector<8x32xf32>
    %388 = vector.extract_strided_slice %385 {offsets = [0, 32], sizes = [8, 32], strides = [1, 1]} : vector<8x96xf32> to vector<8x32xf32>
    %389 = arith.mulf %388, %379 : vector<8x32xf32>
    %390 = vector.extract_strided_slice %385 {offsets = [0, 0], sizes = [8, 32], strides = [1, 1]} : vector<8x96xf32> to vector<8x32xf32>
    %391 = arith.mulf %390, %387 : vector<8x32xf32>
    %392 = arith.addf %389, %391 : vector<8x32xf32>
    %393 = vector.extract_strided_slice %385 {offsets = [0, 64], sizes = [8, 32], strides = [1, 1]} : vector<8x96xf32> to vector<8x32xf32>
    %394 = math.tanh %392 : vector<8x32xf32>
    %395 = arith.mulf %393, %394 : vector<8x32xf32>
    %396 = vector.extract_strided_slice %363 {offsets = [0, 32], sizes = [8, 32], strides = [1, 1]} : vector<8x64xf32> to vector<8x32xf32>
    %397 = vector.extract_strided_slice %378 {offsets = [0, 0], sizes = [8, 96], strides = [1, 1]} : vector<8x128xf32> to vector<8x96xf32>
    %398 = arith.negf %397 : vector<8x96xf32>
    %399 = math.exp %398 : vector<8x96xf32>
    %cst_102 = arith.constant 1.000000e+00 : f32
    %400 = vector.broadcast %cst_102 : f32 to vector<8x96xf32>
    %401 = arith.addf %400, %399 : vector<8x96xf32>
    %402 = arith.divf %400, %401 : vector<8x96xf32>
    %403 = vector.extract_strided_slice %378 {offsets = [0, 96], sizes = [8, 32], strides = [1, 1]} : vector<8x128xf32> to vector<8x32xf32>
    %404 = math.tanh %403 : vector<8x32xf32>
    %405 = vector.extract_strided_slice %402 {offsets = [0, 32], sizes = [8, 32], strides = [1, 1]} : vector<8x96xf32> to vector<8x32xf32>
    %406 = arith.mulf %405, %396 : vector<8x32xf32>
    %407 = vector.extract_strided_slice %402 {offsets = [0, 0], sizes = [8, 32], strides = [1, 1]} : vector<8x96xf32> to vector<8x32xf32>
    %408 = arith.mulf %407, %404 : vector<8x32xf32>
    %409 = arith.addf %406, %408 : vector<8x32xf32>
    %410 = vector.extract_strided_slice %402 {offsets = [0, 64], sizes = [8, 32], strides = [1, 1]} : vector<8x96xf32> to vector<8x32xf32>
    %411 = math.tanh %409 : vector<8x32xf32>
    %412 = arith.mulf %410, %411 : vector<8x32xf32>
    %413 = arith.index_cast %c6_i32 : i32 to index
    %c0_103 = arith.constant 0 : index
    %c0_104 = arith.constant 0 : index
    %414 = vector.load %arg10[%413, %c0_103, %c0_104] : memref<8x8x32xf32, #tpu.memory_space<vmem>>, vector<1x8x32xf32>
    %415 = vector.shape_cast %414 : vector<1x8x32xf32> to vector<8x32xf32>
    %416 = vector.shape_cast %395 : vector<8x32xf32> to vector<1x8x32xf32>
    tpu.vector_store %arg10[%413, %c0_103, %c0_104], %416 {strides = array<i32>} : memref<8x8x32xf32, #tpu.memory_space<vmem>>, vector<1x8x32xf32>,
    %417 = arith.index_cast %364 : i32 to index
    %c0_105 = arith.constant 0 : index
    %c0_106 = arith.constant 0 : index
    %418 = vector.load %arg11[%417, %c0_105, %c0_106] : memref<8x8x32xf32, #tpu.memory_space<vmem>>, vector<1x8x32xf32>
    %419 = vector.shape_cast %418 : vector<1x8x32xf32> to vector<8x32xf32>
    %420 = vector.shape_cast %412 : vector<8x32xf32> to vector<1x8x32xf32>
    tpu.vector_store %arg11[%417, %c0_105, %c0_106], %420 {strides = array<i32>} : memref<8x8x32xf32, #tpu.memory_space<vmem>>, vector<1x8x32xf32>,
    %421 = tpu.concatenate %395, %412 in 1 : vector<8x32xf32>, vector<8x32xf32> -> vector<8x64xf32>
    %422 = tpu.concatenate %392, %409 in 1 : vector<8x32xf32>, vector<8x32xf32> -> vector<8x64xf32>
    %c7_i32_107 = arith.constant 7 : i32
    %c7_i32_108 = arith.constant 7 : i32
    %423 = arith.subi %c7_i32_108, %c7_i32_107 : i32
    %c0_109 = arith.constant 0 : index
    %c0_110 = arith.constant 0 : index
    %424 = vector.load %arg4[%c0_109, %c0_110] : memref<64x256xf32, #tpu.memory_space<vmem>>, vector<64x256xf32>
    %cst_111 = arith.constant dense<0.000000e+00> : vector<8x256xf32>
    %425 = tpu.matmul %421, %424, %cst_111 {dimension_numbers = #tpu.dot_dimension_numbers<[1], [0], [0], [1], [0, 0, 1, 1], [], []>} : vector<8x64xf32>, vector<64x256xf32>, vector<8x256xf32> -> vector<8x256xf32>
    %426 = arith.index_cast %c7_i32_107 : i32 to index
    %c0_112 = arith.constant 0 : index
    %c0_113 = arith.constant 0 : index
    %427 = vector.load %arg9[%426, %c0_112, %c0_113] : memref<8x8x256xf32, #tpu.memory_space<vmem>>, vector<1x8x256xf32>
    %428 = vector.shape_cast %427 : vector<1x8x256xf32> to vector<8x256xf32>
    %429 = vector.extract_strided_slice %428 {offsets = [0, 0], sizes = [8, 128], strides = [1, 1]} : vector<8x256xf32> to vector<8x128xf32>
    %430 = vector.extract_strided_slice %425 {offsets = [0, 0], sizes = [8, 128], strides = [1, 1]} : vector<8x256xf32> to vector<8x128xf32>
    %431 = arith.addf %429, %430 : vector<8x128xf32>
    %432 = arith.index_cast %423 : i32 to index
    %c0_114 = arith.constant 0 : index
    %c0_115 = arith.constant 0 : index
    %433 = vector.load %arg9[%432, %c0_114, %c0_115] : memref<8x8x256xf32, #tpu.memory_space<vmem>>, vector<1x8x256xf32>
    %434 = vector.shape_cast %433 : vector<1x8x256xf32> to vector<8x256xf32>
    %435 = vector.extract_strided_slice %434 {offsets = [0, 128], sizes = [8, 128], strides = [1, 1]} : vector<8x256xf32> to vector<8x128xf32>
    %436 = vector.extract_strided_slice %425 {offsets = [0, 128], sizes = [8, 128], strides = [1, 1]} : vector<8x256xf32> to vector<8x128xf32>
    %437 = arith.addf %435, %436 : vector<8x128xf32>
    %438 = vector.extract_strided_slice %422 {offsets = [0, 0], sizes = [8, 32], strides = [1, 1]} : vector<8x64xf32> to vector<8x32xf32>
    %439 = vector.extract_strided_slice %431 {offsets = [0, 0], sizes = [8, 96], strides = [1, 1]} : vector<8x128xf32> to vector<8x96xf32>
    %440 = arith.negf %439 : vector<8x96xf32>
    %441 = math.exp %440 : vector<8x96xf32>
    %cst_116 = arith.constant 1.000000e+00 : f32
    %442 = vector.broadcast %cst_116 : f32 to vector<8x96xf32>
    %443 = arith.addf %442, %441 : vector<8x96xf32>
    %444 = arith.divf %442, %443 : vector<8x96xf32>
    %445 = vector.extract_strided_slice %431 {offsets = [0, 96], sizes = [8, 32], strides = [1, 1]} : vector<8x128xf32> to vector<8x32xf32>
    %446 = math.tanh %445 : vector<8x32xf32>
    %447 = vector.extract_strided_slice %444 {offsets = [0, 32], sizes = [8, 32], strides = [1, 1]} : vector<8x96xf32> to vector<8x32xf32>
    %448 = arith.mulf %447, %438 : vector<8x32xf32>
    %449 = vector.extract_strided_slice %444 {offsets = [0, 0], sizes = [8, 32], strides = [1, 1]} : vector<8x96xf32> to vector<8x32xf32>
    %450 = arith.mulf %449, %446 : vector<8x32xf32>
    %451 = arith.addf %448, %450 : vector<8x32xf32>
    %452 = vector.extract_strided_slice %444 {offsets = [0, 64], sizes = [8, 32], strides = [1, 1]} : vector<8x96xf32> to vector<8x32xf32>
    %453 = math.tanh %451 : vector<8x32xf32>
    %454 = arith.mulf %452, %453 : vector<8x32xf32>
    %455 = vector.extract_strided_slice %422 {offsets = [0, 32], sizes = [8, 32], strides = [1, 1]} : vector<8x64xf32> to vector<8x32xf32>
    %456 = vector.extract_strided_slice %437 {offsets = [0, 0], sizes = [8, 96], strides = [1, 1]} : vector<8x128xf32> to vector<8x96xf32>
    %457 = arith.negf %456 : vector<8x96xf32>
    %458 = math.exp %457 : vector<8x96xf32>
    %cst_117 = arith.constant 1.000000e+00 : f32
    %459 = vector.broadcast %cst_117 : f32 to vector<8x96xf32>
    %460 = arith.addf %459, %458 : vector<8x96xf32>
    %461 = arith.divf %459, %460 : vector<8x96xf32>
    %462 = vector.extract_strided_slice %437 {offsets = [0, 96], sizes = [8, 32], strides = [1, 1]} : vector<8x128xf32> to vector<8x32xf32>
    %463 = math.tanh %462 : vector<8x32xf32>
    %464 = vector.extract_strided_slice %461 {offsets = [0, 32], sizes = [8, 32], strides = [1, 1]} : vector<8x96xf32> to vector<8x32xf32>
    %465 = arith.mulf %464, %455 : vector<8x32xf32>
    %466 = vector.extract_strided_slice %461 {offsets = [0, 0], sizes = [8, 32], strides = [1, 1]} : vector<8x96xf32> to vector<8x32xf32>
    %467 = arith.mulf %466, %463 : vector<8x32xf32>
    %468 = arith.addf %465, %467 : vector<8x32xf32>
    %469 = vector.extract_strided_slice %461 {offsets = [0, 64], sizes = [8, 32], strides = [1, 1]} : vector<8x96xf32> to vector<8x32xf32>
    %470 = math.tanh %468 : vector<8x32xf32>
    %471 = arith.mulf %469, %470 : vector<8x32xf32>
    %472 = arith.index_cast %c7_i32_107 : i32 to index
    %c0_118 = arith.constant 0 : index
    %c0_119 = arith.constant 0 : index
    %473 = vector.load %arg10[%472, %c0_118, %c0_119] : memref<8x8x32xf32, #tpu.memory_space<vmem>>, vector<1x8x32xf32>
    %474 = vector.shape_cast %473 : vector<1x8x32xf32> to vector<8x32xf32>
    %475 = vector.shape_cast %454 : vector<8x32xf32> to vector<1x8x32xf32>
    tpu.vector_store %arg10[%472, %c0_118, %c0_119], %475 {strides = array<i32>} : memref<8x8x32xf32, #tpu.memory_space<vmem>>, vector<1x8x32xf32>,
    %476 = arith.index_cast %423 : i32 to index
    %c0_120 = arith.constant 0 : index
    %c0_121 = arith.constant 0 : index
    %477 = vector.load %arg11[%476, %c0_120, %c0_121] : memref<8x8x32xf32, #tpu.memory_space<vmem>>, vector<1x8x32xf32>
    %478 = vector.shape_cast %477 : vector<1x8x32xf32> to vector<8x32xf32>
    %479 = vector.shape_cast %471 : vector<8x32xf32> to vector<1x8x32xf32>
    tpu.vector_store %arg11[%476, %c0_120, %c0_121], %479 {strides = array<i32>} : memref<8x8x32xf32, #tpu.memory_space<vmem>>, vector<1x8x32xf32>,
    %480 = tpu.concatenate %454, %471 in 1 : vector<8x32xf32>, vector<8x32xf32> -> vector<8x64xf32>
    %481 = tpu.concatenate %451, %468 in 1 : vector<8x32xf32>, vector<8x32xf32> -> vector<8x64xf32>
    %c8_i32 = arith.constant 8 : i32
    %c0_122 = arith.constant 0 : index
    %c0_123 = arith.constant 0 : index
    %c0_124 = arith.constant 0 : index
    %482 = vector.load %arg10[%c0_122, %c0_123, %c0_124] : memref<8x8x32xf32, #tpu.memory_space<vmem>>, vector<8x8x32xf32>
    %483 = vector.shape_cast %482 : vector<8x8x32xf32> to vector<64x32xf32>
    %c0_125 = arith.constant 0 : index
    %c0_126 = arith.constant 0 : index
    %c0_127 = arith.constant 0 : index
    %484 = vector.load %arg11[%c0_125, %c0_126, %c0_127] : memref<8x8x32xf32, #tpu.memory_space<vmem>>, vector<8x8x32xf32>
    %485 = vector.shape_cast %484 : vector<8x8x32xf32> to vector<64x32xf32>
    %c0_128 = arith.constant 0 : index
    %c0_129 = arith.constant 0 : index
    %486 = vector.load %arg5[%c0_128, %c0_129] : memref<32x128xf32, #tpu.memory_space<vmem>>, vector<32x128xf32>
    %cst_130 = arith.constant dense<0.000000e+00> : vector<64x128xf32>
    %487 = tpu.matmul %483, %486, %cst_130 {dimension_numbers = #tpu.dot_dimension_numbers<[1], [0], [0], [1], [0, 0, 1, 1], [], []>} : vector<64x32xf32>, vector<32x128xf32>, vector<64x128xf32> -> vector<64x128xf32>
    %c0_131 = arith.constant 0 : index
    %c0_132 = arith.constant 0 : index
    %488 = vector.load %arg6[%c0_131, %c0_132] : memref<32x128xf32, #tpu.memory_space<vmem>>, vector<32x128xf32>
    %cst_133 = arith.constant dense<0.000000e+00> : vector<64x128xf32>
    %489 = tpu.matmul %485, %488, %cst_133 {dimension_numbers = #tpu.dot_dimension_numbers<[1], [0], [0], [1], [0, 0, 1, 1], [], []>} : vector<64x32xf32>, vector<32x128xf32>, vector<64x128xf32> -> vector<64x128xf32>
    %490 = arith.addf %487, %489 : vector<64x128xf32>
    %c0_134 = arith.constant 0 : index
    %c0_135 = arith.constant 0 : index
    %491 = vector.load %arg7[%c0_134, %c0_135] : memref<1x128xf32, #tpu.memory_space<vmem>>, vector<1x128xf32>
    %492 = vector.broadcast %491 : vector<1x128xf32> to vector<64x128xf32>
    %493 = arith.addf %490, %492 : vector<64x128xf32>
    %494 = vector.shape_cast %493 : vector<64x128xf32> to vector<8x8x128xf32>
    %c0_136 = arith.constant 0 : index
    %c0_137 = arith.constant 0 : index
    %c0_138 = arith.constant 0 : index
    %495 = vector.load %arg8[%c0_136, %c0_137, %c0_138] : memref<8x8x128xf32, #tpu.memory_space<vmem>>, vector<8x8x128xf32>
    tpu.vector_store %arg8[%c0_136, %c0_137, %c0_138], %494 {strides = array<i32>} : memref<8x8x128xf32, #tpu.memory_space<vmem>>, vector<8x8x128xf32>,
    return
  }
  func.func @transform_0(%arg0: i32) -> (i32, i32, i32) {
    %c0_i32 = arith.constant 0 : i32
    %c0_i32_0 = arith.constant 0 : i32
    %c0_i32_1 = arith.constant 0 : i32
    return %c0_i32, %arg0, %c0_i32_0 : i32, i32, i32
  }
  func.func @transform_1(%arg0: i32) -> (i32, i32) {
    %c0_i32 = arith.constant 0 : i32
    %c0_i32_0 = arith.constant 0 : i32
    %c0_i32_1 = arith.constant 0 : i32
    return %c0_i32, %c0_i32_0 : i32, i32
  }
  func.func @transform_2(%arg0: i32) -> (i32, i32) {
    %c0_i32 = arith.constant 0 : i32
    %c0_i32_0 = arith.constant 0 : i32
    %c0_i32_1 = arith.constant 0 : i32
    return %c0_i32, %c0_i32_0 : i32, i32
  }
  func.func @transform_3(%arg0: i32) -> (i32, i32) {
    %c0_i32 = arith.constant 0 : i32
    %c0_i32_0 = arith.constant 0 : i32
    %c0_i32_1 = arith.constant 0 : i32
    return %c0_i32, %c0_i32_0 : i32, i32
  }
  func.func @transform_4(%arg0: i32) -> (i32, i32) {
    %c0_i32 = arith.constant 0 : i32
    %c0_i32_0 = arith.constant 0 : i32
    %c0_i32_1 = arith.constant 0 : i32
    return %c0_i32, %c0_i32_0 : i32, i32
  }
  func.func @transform_5(%arg0: i32) -> (i32, i32) {
    %c0_i32 = arith.constant 0 : i32
    %c0_i32_0 = arith.constant 0 : i32
    %c0_i32_1 = arith.constant 0 : i32
    return %c0_i32, %c0_i32_0 : i32, i32
  }
  func.func @transform_6(%arg0: i32) -> (i32, i32) {
    %c0_i32 = arith.constant 0 : i32
    %c0_i32_0 = arith.constant 0 : i32
    %c0_i32_1 = arith.constant 0 : i32
    return %c0_i32, %c0_i32_0 : i32, i32
  }
  func.func @transform_7(%arg0: i32) -> (i32, i32, i32) {
    %c0_i32 = arith.constant 0 : i32
    %c0_i32_0 = arith.constant 0 : i32
    %c0_i32_1 = arith.constant 0 : i32
    return %c0_i32, %arg0, %c0_i32_0 : i32, i32, i32
  }
}

</mosaic_0001>

<bundles_post_ra>
// kernel: tpu_custom_call.1
= control target key start
LH: loop header
LB: loop body
LE: loop exit
PB: predicated region body
PF: predicated region fallthrough
CT: control target
= control target key end

     0   :  { %12 = vsyncpa [#allocation6], 0  ;;  %s2819_s0 = inlined_call_operand.hbm [shape: f32[8,8,32], index: 0, kind: input, shape index: {}]   ;;  %s2820_s1 = inlined_call_operand.hbm [shape: f32[32,256], index: 1, kind: input, shape index: {}]   ;;  %s2821_s2 = inlined_call_operand.vmem [shape: f32[1,256], index: 2, kind: input, shape index: {}]   ;;  %s2822_s3 = inlined_call_operand.hbm [shape: f32[64,256], index: 3, kind: input, shape index: {}]   ;;  %s2823_s4 = inlined_call_operand.hbm [shape: f32[32,128], index: 4, kind: input, shape index: {}]   ;;  %s2824_s5 = inlined_call_operand.hbm [shape: f32[32,128], index: 5, kind: input, shape index: {}]   ;;  %s2825_s6 = inlined_call_operand.vmem [shape: f32[1,128], index: 6, kind: input, shape index: {}]   ;;  %s2826_s7 = inlined_call_operand.hbm [shape: f32[8,8,128], index: 7, kind: output, shape index: {}]  }
   0x1   :  { %13 = vsyncpa [#allocation9], 0 }
   0x2   :  { %14 = vsyncpa [#allocation12], 0 }
   0x3   :  { %15 = vsyncpa [#allocation7], 0  ;;  %s2320_s24 = smov [#allocation8]  }
   0x4   :  { %s33_s25 = sshll.u32 %s2320_s24, 4  ;;  %s34_s25 = int_to_ptr.vmem [resolvable:$true] %s33_s25 }
   0x5   :  { %s2200_s26 = scalar_lea.vmem %s34_s25, 1024  ;;  %p2205_p1 = scmp.lt.s32.totalorder %s34_s25, %s34_s25 }
   0x6   :  { %p2201_p0 = scmp.ne.s32.totalorder %s34_s25, %s2200_s26  ;;  %p2206_p2 = scmp.lt.s32.totalorder %s2200_s26, %s2200_s26 }
   0x8   :  { %p2207_p3 = por %p2206_p2, %p2205_p1 }
   0xa   :  { %p2208_p4 = pnand %p2207_p3, %p2201_p0 }
   0xc   :  { %2211 = shalt.err (!%p2208_p4)
}
   0xd   :  { %s2321_s27 = smov 256   ;;  %s2322_s28 = smov 16  }
   0xe   :  { %39 = dma.hbm_to_vmem [thread:$0]  %s2820_s1, 1024, %s34_s25, [#allocation9], %s2321_s27, %s2321_s27, %s2322_s28  }
   0xf   :  { %s2323_s8 = smov [#allocation11]   ;;  %s2324_s10 = smov [#allocation5]  }
  0x10   :  { %s59_s9 = sshll.u32 %s2323_s8, 4  ;;  %s21_s11 = sshll.u32 %s2324_s10, 4  ;;  %s60_s9 = int_to_ptr.vmem [resolvable:$true] %s59_s9  ;;  %s22_s11 = int_to_ptr.vmem [resolvable:$true] %s21_s11 }
  0x11   :  { %s2220_s12 = scalar_lea.vmem %s60_s9, 512  ;;  %p2225_p6 = scmp.lt.s32.totalorder %s60_s9, %s60_s9 }
  0x12   :  { %p2221_p5 = scmp.ne.s32.totalorder %s60_s9, %s2220_s12  ;;  %p2226_p7 = scmp.lt.s32.totalorder %s2220_s12, %s2220_s12 }
  0x14   :  { %p2227_p8 = por %p2226_p7, %p2225_p6 }
  0x16   :  { %p2228_p9 = pnand %p2227_p8, %p2221_p5 }
  0x18   :  { %2231 = shalt.err (!%p2228_p9)
}
  0x19   :  { %s2325_s13 = smov 128   ;;  %s2326_s14 = smov 8  }
  0x1a   :  { %65 = dma.hbm_to_vmem [thread:$0]  %s2823_s4, 512, %s60_s9, [#allocation12], %s2325_s13, %s2325_s13, %s2326_s14  }
  0x1b   :  { %s2240_s1 = scalar_lea.vmem %s22_s11, 1024  ;;  %p2245_p11 = scmp.lt.s32.totalorder %s22_s11, %s22_s11 }
  0x1c   :  { %p2241_p10 = scmp.ne.s32.totalorder %s22_s11, %s2240_s1  ;;  %p2246_p12 = scmp.lt.s32.totalorder %s2240_s1, %s2240_s1 }
  0x1e   :  { %p2247_p13 = por %p2246_p12, %p2245_p11 }
  0x20   :  { %p2248_p0 = pnand %p2247_p13, %p2241_p10 }
  0x22   :  { %2251 = shalt.err (!%p2248_p0)
}
  0x23   :  { %27 = dma.hbm_to_vmem [thread:$0]  %s2819_s0, 1024, %s22_s11, [#allocation6], %s2325_s13, %s2325_s13, %s2326_s14  }
  0x24   :  { %s2327_s19 = smov [#allocation10]   ;;  %s2328_s21 = smov [#allocation13]  }
  0x25   :  { %s47_s20 = sshll.u32 %s2327_s19, 4  ;;  %s71_s4 = sshll.u32 %s2328_s21, 4  ;;  %s48_s20 = int_to_ptr.vmem [resolvable:$true] %s47_s20  ;;  %s72_s4 = int_to_ptr.vmem [resolvable:$true] %s71_s4 }
  0x26   :  { %s2260_s22 = scalar_lea.vmem %s48_s20, 2048  ;;  %p2265_p2 = scmp.lt.s32.totalorder %s48_s20, %s48_s20 }
  0x27   :  { %p2261_p1 = scmp.ne.s32.totalorder %s48_s20, %s2260_s22  ;;  %p2266_p3 = scmp.lt.s32.totalorder %s2260_s22, %s2260_s22 }
  0x29   :  { %p2267_p4 = por %p2266_p3, %p2265_p2 }
  0x2b   :  { %p2268_p5 = pnand %p2267_p4, %p2261_p1 }
  0x2d   :  { %2271 = shalt.err (!%p2268_p5)
}
  0x2e   :  { %53 = dma.hbm_to_vmem [thread:$0]  %s2822_s3, 2048, %s48_s20, [#allocation9], %s2321_s27, %s2321_s27, %s2322_s28  }
  0x2f   :  { %s2280_s0 = scalar_lea.vmem %s72_s4, 512  ;;  %p2285_p7 = scmp.lt.s32.totalorder %s72_s4, %s72_s4 }
  0x30   :  { %p2281_p6 = scmp.ne.s32.totalorder %s72_s4, %s2280_s0  ;;  %p2286_p8 = scmp.lt.s32.totalorder %s2280_s0, %s2280_s0 }
  0x32   :  { %p2287_p9 = por %p2286_p8, %p2285_p7 }
  0x34   :  { %p2288_p10 = pnand %p2287_p9, %p2281_p6 }
  0x36   :  { %2291 = shalt.err (!%p2288_p10)
}
  0x37   :  { %77 = dma.hbm_to_vmem [thread:$0]  %s2824_s5, 512, %s72_s4, [#allocation12], %s2325_s13, %s2325_s13, %s2326_s14  }
  0x38   :  { %2312 = dma.done.wait [#allocation6], 1024  }
  0x39   :  { %2313 = vsyncadd [#allocation6], 4294966272 }
  0x3a   :  { %2314 = dma.done.wait [#allocation9], 3072  }
  0x3b   :  { %2315 = vsyncadd [#allocation9], 4294964224 }
  0x3c   :  { %2316 = dma.done.wait [#allocation12], 1024  }
  0x3d   :  { %2317 = vsyncadd [#allocation12], 4294966272  ;;  %v2329_v0 = vmov 0.0   ;;  %v110_v1 = vld [vmem:[#allocation8 + $0x38] sm:$0xff]  ;;  %v109_v3 = vld [vmem:[#allocation8 + $0x30] sm:$0xff]  ;;  %vm123_vm0 = vcmask 261120   ;;  %v113_v33 = vlaneseq }
  0x3e   :  { %212 = vmatprep.mubr.f32.mxu0 %v2329_v0  ;;  %361 = vmatprep.mubr.f32.mxu1 %v2329_v0  ;;  %v2406_v2 = vld [vmem:[#allocation10 + $0x78] sm:$0xff]  ;;  %v2409_v4 = vld [vmem:[#allocation10 + $0x70] sm:$0xff]  ;;  %v108_v5 = vld [vmem:[#allocation8 + $0x28] sm:$0xff]  ;;  %s2331_s27 = smov 64   ;;  %s2332_s28 = smov 96   ;;  %vm293_vm1 = vcmask 523264  }
  0x3f   :  { %172 = vmatprep.subr.mxu0 %v110_v1  ;;  %313 = vmatprep.subr.mxu1 %v2406_v2  ;;  %v2411_v6 = vld [vmem:[#allocation10 + $0x68] sm:$0xff]  ;;  %v107_v7 = vld [vmem:[#allocation8 + $0x20] sm:$0xff]  ;;  %v106_v9 = vld [vmem:[#allocation8 + $0x18] sm:$0xff]  ;;  %v114_v34 = vshrl.u32 %v113_v33, 7 }
  0x40   :  { %173 = vmatpush1.msra.mxu0 %v109_v3  ;;  %314 = vmatpush1.msra.mxu1 %v2409_v4  ;;  %v2414_v8 = vld [vmem:[#allocation10 + $0x60] sm:$0xff]  ;;  %v2417_v10 = vld [vmem:[#allocation10 + $0x58] sm:$0xff]  ;;  %v105_v11 = vld [vmem:[#allocation8 + $0x10] sm:$0xff] }
  0x41   :  { %174 = vmatprep.subr.mxu0 %v108_v5  ;;  %315 = vmatprep.subr.mxu1 %v2411_v6  ;;  %v2419_v12 = vld [vmem:[#allocation10 + $0x50] sm:$0xff]  ;;  %v104_v13 = vld [vmem:[#allocation8 + $0x8] sm:$0xff]  ;;  %v103_v15 = vld [vmem:[#allocation8] sm:$0xff]  ;;  %v119_v35 = vsub.s32 1, %v114_v34  ;;  %v115_v37 = vsub.s32 0, %v114_v34 }
  0x42   :  { %175 = vmatpush1.msra.mxu0 %v107_v7  ;;  %316 = vmatpush1.msra.mxu1 %v2414_v8  ;;  %v2422_v14 = vld [vmem:[#allocation10 + $0x48] sm:$0xff]  ;;  %v2425_v16 = vld [vmem:[#allocation10 + $0x40] sm:$0xff]  ;;  %v2428_v18 = vld [vmem:[#allocation10 + $0x38] sm:$0xff] }
  0x43   :  { %176 = vmatprep.subr.mxu0 %v106_v9  ;;  %317 = vmatprep.subr.mxu1 %v2417_v10  ;;  %v95_v17 = vld [vmem:[#allocation5] sm:$0xff]  ;;  %v2431_v19 = vld [vmem:[#allocation10 + $0x30] sm:$0xff]  ;;  %v2434_v20 = vld [vmem:[#allocation10 + $0x28] sm:$0xff] }
  0x44   :  { %177 = vmatpush1.msra.mxu0 %v105_v11  ;;  %318 = vmatpush1.msra.mxu1 %v2419_v12  ;;  %v2438_v21 = vld [vmem:[#allocation10 + $0x20] sm:$0xff]  ;;  %v96_v22 = vld [vmem:[#allocation5 + $0x8] sm:$0xff]  ;;  %v2442_v23 = vld [vmem:[#allocation10 + $0x18] sm:$0xff] }
  0x45   :  { %178 = vmatprep.subr.mxu0 %v104_v13  ;;  %319 = vmatprep.subr.mxu1 %v2422_v14  ;;  %v2445_v24 = vld [vmem:[#allocation10 + $0x10] sm:$0xff]  ;;  %v2449_v25 = vld [vmem:[#allocation10 + $0x8] sm:$0xff]  ;;  %v2454_v26 = vld [vmem:[#allocation10] sm:$0xff] }
  0x46   :  { %179 = vmatpush1.msra.mxu0 %v103_v15  ;;  %320 = vmatpush1.msra.mxu1 %v2425_v16  ;;  %v97_v27 = vld [vmem:[#allocation5 + $0x10] sm:$0xff]  ;;  %v98_v28 = vld [vmem:[#allocation5 + $0x18] sm:$0xff]  ;;  %v99_v29 = vld [vmem:[#allocation5 + $0x20] sm:$0xff] }
  0x47   :  { %1930 = vmatmul.mubr.msk.f32.vlgmr.msra.gmra.mxu0 %vm123_vm0, %v95_v17  ;;  %321 = vmatprep.subr.mxu1 %v2428_v18  ;;  %v100_v30 = vld [vmem:[#allocation5 + $0x28] sm:$0xff]  ;;  %v101_v31 = vld [vmem:[#allocation5 + $0x30] sm:$0xff]  ;;  %v102_v32 = vld [vmem:[#allocation5 + $0x38] sm:$0xff] }
  0x48   :  { %322 = vmatpush1.msra.mxu1 %v2431_v19  ;;  %218 = vmatprep.mubr.f32.mxu0 %v2329_v0  ;;  %v111_v36 = vld [vmem:[%s2821_s2] sm:$0x3]  ;;  %s2330_s2 = smov 32  }
  0x49   :  { %323 = vmatprep.subr.mxu1 %v2434_v20  ;;  %645 = vmatprep.subr.mxu0 %v2406_v2  ;;  %v120_v38 = vrot.slane %v111_v36, %v119_v35  ;;  %v116_v41 = vrot.slane %v111_v36, %v115_v37 }
  0x4a   :  { %324 = vmatpush1.msra.mxu1 %v2438_v21  ;;  %646 = vmatpush1.msra.mxu0 %v2409_v4 }
  0x4b   :  { %1931 = vmatmul.mubr.msk.f32.gmra.mxu0 %vm123_vm0, %v96_v22  ;;  %325 = vmatprep.subr.mxu1 %v2442_v23 }
  0x4c   :  { %326 = vmatpush1.msra.mxu1 %v2445_v24  ;;  %224 = vmatprep.mubr.f32.mxu0 %v2329_v0 }
  0x4d   :  { %327 = vmatprep.subr.mxu1 %v2449_v25  ;;  %647 = vmatprep.subr.mxu0 %v2411_v6 }
  0x4e   :  { %328 = vmatpush1.msra.mxu1 %v2454_v26  ;;  %648 = vmatpush1.msra.mxu0 %v2414_v8 }
  0x4f   :  { %1932 = vmatmul.mubr.msk.f32.gmra.mxu0 %vm123_vm0, %v97_v27  ;;  %362 = vmatmul.mubr.f32.vlgmr.msra.gmra.mxu1 %v2329_v0 }
  0x50   :  { %230 = vmatprep.mubr.f32.mxu0 %v2329_v0  ;;  %476 = vmatprep.subr.mxu1 %v2406_v2 }
  0x51   :  { %477 = vmatpush1.msra.mxu1 %v2409_v4  ;;  %524 = vmatprep.mubr.f32.mxu1 %v2329_v0 }
  0x52   :  { %478 = vmatprep.subr.mxu1 %v2411_v6  ;;  %649 = vmatprep.subr.mxu0 %v2417_v10 }
  0x53   :  { %1933 = vmatmul.mubr.msk.f32.gmra.mxu0 %vm123_vm0, %v98_v28  ;;  %479 = vmatpush1.msra.mxu1 %v2414_v8 }
  0x54   :  { %236 = vmatprep.mubr.f32.mxu0 %v2329_v0  ;;  %480 = vmatprep.subr.mxu1 %v2417_v10 }
  0x55   :  { %481 = vmatpush1.msra.mxu1 %v2419_v12  ;;  %650 = vmatpush1.msra.mxu0 %v2419_v12 }
  0x56   :  { %482 = vmatprep.subr.mxu1 %v2422_v14  ;;  %651 = vmatprep.subr.mxu0 %v2422_v14 }
  0x57   :  { %1934 = vmatmul.mubr.msk.f32.gmra.mxu0 %vm123_vm0, %v99_v29  ;;  %483 = vmatpush1.msra.mxu1 %v2425_v16 }
  0x58   :  { %242 = vmatprep.mubr.f32.mxu0 %v2329_v0  ;;  %484 = vmatprep.subr.mxu1 %v2428_v18 }
  0x59   :  { %485 = vmatpush1.msra.mxu1 %v2431_v19  ;;  %652 = vmatpush1.msra.mxu0 %v2425_v16 }
  0x5a   :  { %486 = vmatprep.subr.mxu1 %v2434_v20  ;;  %653 = vmatprep.subr.mxu0 %v2428_v18 }
  0x5b   :  { %1935 = vmatmul.mubr.msk.f32.gmra.mxu0 %vm123_vm0, %v100_v30  ;;  %487 = vmatpush1.msra.mxu1 %v2438_v21 }
  0x5c   :  { %248 = vmatprep.mubr.f32.mxu0 %v2329_v0  ;;  %488 = vmatprep.subr.mxu1 %v2442_v23 }
  0x5d   :  { %489 = vmatpush1.msra.mxu1 %v2445_v24  ;;  %654 = vmatpush1.msra.mxu0 %v2431_v19 }
  0x5e   :  { %490 = vmatprep.subr.mxu1 %v2449_v25  ;;  %655 = vmatprep.subr.mxu0 %v2434_v20 }
  0x5f   :  { %1936 = vmatmul.mubr.msk.f32.gmra.mxu0 %vm123_vm0, %v101_v31  ;;  %491 = vmatpush1.msra.mxu1 %v2454_v26 }
  0x60   :  { %254 = vmatprep.mubr.f32.mxu0 %v2329_v0  ;;  %656 = vmatpush1.msra.mxu0 %v2438_v21 }
  0x61   :  { %657 = vmatprep.subr.mxu0 %v2442_v23  ;;  %814 = vmatprep.subr.mxu1 %v2406_v2 }
  0x62   :  { %658 = vmatpush1.msra.mxu0 %v2445_v24 }
  0x63   :  { %1937 = vmatmul.mubr.msk.f32.gmra.mxu0 %vm123_vm0, %v102_v32  ;;  %659 = vmatprep.subr.mxu0 %v2449_v25 }
  0x64   :  { %660 = vmatpush1.msra.mxu0 %v2454_v26  ;;  %693 = vmatprep.mubr.f32.mxu0 %v2329_v0 }
  0x65   :  { %983 = vmatprep.subr.mxu0 %v2406_v2 }
 0x107   :  { %v214_v39 = vpop.f32.mrf.mxu0 }
 0x108   :  { %v215_v46 = vadd.f32 %v214_v39, %v116_v41 }
 0x109   :  { %v216_v40 = vpop.f32.mrf.mxu0 }
 0x10a   :  { %v2509_v42 = vadd.f32 %v216_v40, %v120_v38 }
 0x10b   :  { %v220_v43 = vpop.f32.mrf.mxu0 }
 0x10c   :  { %v2511_v44 = vadd.f32 %v220_v43, %v116_v41 }
 0x10d   :  { %v222_v45 = vpop.f32.mrf.mxu0 }
 0x10e   :  { %v2513_v47 = vadd.f32 %v222_v45, %v120_v38 }
 0x10f   :  { %v226_v48 = vpop.f32.mrf.mxu0  ;;  %v363_v49 = vpop.f32.mrf.mxu1 }
 0x110   :  { %v2515_v50 = vadd.f32 %v226_v48, %v116_v41  ;;  %v369_v51 = vadd.f32 %v363_v49, %v215_v46 }
 0x111   :  { %v228_v52 = vpop.f32.mrf.mxu0  ;;  %v365_v28 = vpop.f32.mrf.mxu1 }
 0x112   :  { %2064 = vtanh.f32 %v369_v51  ;;  %v2517_v53 = vadd.f32 %v228_v52, %v120_v38  ;;  %v1938_v31 = vmul.f32 -1.442695, %v369_v51 }
 0x113   :  { %v232_v54 = vpop.f32.mrf.mxu0 }
 0x114   :  { %v2519_v55 = vadd.f32 %v232_v54, %v116_v41 }
 0x115   :  { %v234_v56 = vpop.f32.mrf.mxu0 }
 0x116   :  { %v2521_v57 = vadd.f32 %v234_v56, %v120_v38 }
 0x117   :  { %v238_v58 = vpop.f32.mrf.mxu0 }
 0x118   :  { %v2523_v59 = vadd.f32 %v238_v58, %v116_v41 }
 0x119   :  { %v240_v60 = vpop.f32.mrf.mxu0 }
 0x11a   :  { %v2525_v61 = vadd.f32 %v240_v60, %v120_v38 }
 0x11b   :  { %v244_v62 = vpop.f32.mrf.mxu0 }
 0x11c   :  { %v2527_v63 = vadd.f32 %v244_v62, %v116_v41 }
 0x11d   :  { %v246_v1 = vpop.f32.mrf.mxu0 }
 0x11e   :  { %v2529_v3 = vadd.f32 %v246_v1, %v120_v38 }
 0x11f   :  { %v2065_v5 = vpop.eup %2064  ;;  %v250_v7 = vpop.f32.mrf.mxu0 }
 0x120   :  { %v2531_v9 = vadd.f32 %v250_v7, %v116_v41  ;;  %382 = vrot.lane.b32.xlu0 %v2065_v5, %s2330_s2 }
 0x121   :  { %v252_v11 = vpop.f32.mrf.mxu0 }
 0x122   :  { %v2534_v13 = vadd.f32 %v252_v11, %v120_v38 }
 0x123   :  { %v256_v15 = vpop.f32.mrf.mxu0 }
 0x124   :  { %v2536_v17 = vadd.f32 %v256_v15, %v116_v41 }
 0x125   :  { %v258_v22 = vpop.f32.mrf.mxu0 }
 0x126   :  { %v259_v27 = vadd.f32 %v258_v22, %v120_v38 }
 0x128   :  { %v372_v29 = vadd.f32 %v365_v28, %v259_v27 }
 0x12a   :  { %2066 = vtanh.f32 %v372_v29  ;;  %v1939_v34 = vmul.f32 -1.442695, %v372_v29 }
 0x12b   :  { %2068 = vpow2.f32 %v1938_v31 }
 0x137   :  { %v2067_v30 = vpop.eup %2066 }
 0x138   :  { %406 = vrot.lane.b32.xlu0 %v2067_v30, %s2330_s2  ;;  %v2069_v32 = vpop.eup %2068 }
 0x139   :  { %v376_v33 = vadd.f32 1.0, %v2069_v32 }
 0x13b   :  { %2070 = vrcp.f32 %v376_v33 }
 0x13c   :  { %2072 = vpow2.f32 %v1939_v34 }
 0x148   :  { %v2071_v35 = vpop.eup %2070 }
 0x149   :  { %v2073_v39 = vpop.eup %2072  ;;  %v380_v45 = vmul.f32 0.0, %v2071_v35 }
 0x14a   :  { %v400_v38 = vadd.f32 1.0, %v2073_v39 }
 0x14c   :  { %2074 = vrcp.f32 %v400_v38 }
 0x159   :  { %v2075_v40 = vpop.eup %2074 }
 0x15a   :  { %v404_v51 = vmul.f32 0.0, %v2075_v40 }
 0x192   :  { %v383_v36 = vpop.permute.xlu0 %382 }
 0x193   :  { %v385_v37 = vmul.f32 %v2071_v35, %v383_v36 }
 0x195   :  { %387 = vrot.lane.b32.xlu1 %v385_v37, %s2330_s2 }
 0x1aa   :  { %v407_v41 = vpop.permute.xlu0 %406 }
 0x1ab   :  { %v409_v43 = vmul.f32 %v2075_v40, %v407_v41 }
 0x1ad   :  { %411 = vrot.lane.b32.xlu1 %v409_v43, %s2330_s2 }
 0x207   :  { %v388_v46 = vpop.permute.xlu1 %387 }
 0x208   :  { %v390_v48 = vadd.f32 %v388_v46, %v380_v45 }
 0x20a   :  { %2076 = vtanh.f32 %v390_v48 }
 0x217   :  { %v2077_v49 = vpop.eup %2076 }
 0x218   :  { %393 = vrot.lane.b32.xlu0 %v2077_v49, %s2330_s2 }
 0x21f   :  { %v412_v52 = vpop.permute.xlu1 %411 }
 0x220   :  { %v414_v54 = vadd.f32 %v412_v52, %v404_v51 }
 0x222   :  { %2078 = vtanh.f32 %v414_v54 }
 0x22f   :  { %v2079_v56 = vpop.eup %2078 }
 0x230   :  { %417 = vrot.lane.b32.xlu1 %v2079_v56, %s2330_s2 }
 0x28a   :  { %v394_v58 = vpop.permute.xlu0 %393 }
 0x28b   :  { %v396_v60 = vmul.f32 %v2071_v35, %v394_v58 }
 0x28d   :  { %422 = vrot.lane.b32.xlu0 %v396_v60, %s2331_s27 }
 0x291   :  { %437 = vrot.lane.b32.xlu0 %v390_v48, %s2332_s28 }
 0x2a2   :  { %v418_v62 = vpop.permute.xlu1 %417 }
 0x2a3   :  { %v2545_v1 = vmul.f32 %v2075_v40, %v418_v62 }
 0x2a5   :  { %432 = vrot.lane.b32.xlu1 %v2545_v1, %s2332_s28 }
 0x2ff   :  { %v423_v5 = vpop.permute.xlu0 %422 }
 0x300   :  { %425 = vst.msk [vmem:[#allocation3] sm:$0xff] %vm123_vm0, %v423_v5 }
 0x303   :  { %v438_v30 = vpop.permute.xlu0 %437 }
 0x304   :  { %v440_v32 = vsel %vm123_vm0, %v438_v30, %v414_v54 }
 0x317   :  { %v433_v7 = vpop.permute.xlu1 %432 }
 0x318   :  { %v435_v11 = vsel %vm123_vm0, %v423_v5, %v433_v7 }
 0x319   :  { %1940 = vmatmul.mubr.msk.f32.vlgmr.msra.gmra.mxu1 %vm293_vm1, %v435_v11 }
 0x31a   :  { %815 = vmatpush1.msra.mxu1 %v2409_v4  ;;  %862 = vmatprep.mubr.f32.mxu1 %v2329_v0 }
 0x31b   :  { %816 = vmatprep.subr.mxu1 %v2411_v6 }
 0x31c   :  { %817 = vmatpush1.msra.mxu1 %v2414_v8 }
 0x31d   :  { %818 = vmatprep.subr.mxu1 %v2417_v10 }
 0x31e   :  { %819 = vmatpush1.msra.mxu1 %v2419_v12 }
 0x31f   :  { %820 = vmatprep.subr.mxu1 %v2422_v14 }
 0x320   :  { %821 = vmatpush1.msra.mxu1 %v2425_v16 }
 0x321   :  { %822 = vmatprep.subr.mxu1 %v2428_v18 }
 0x322   :  { %823 = vmatpush1.msra.mxu1 %v2431_v19 }
 0x323   :  { %824 = vmatprep.subr.mxu1 %v2434_v20 }
 0x324   :  { %825 = vmatpush1.msra.mxu1 %v2438_v21 }
 0x325   :  { %826 = vmatprep.subr.mxu1 %v2442_v23 }
 0x326   :  { %827 = vmatpush1.msra.mxu1 %v2445_v24 }
 0x327   :  { %828 = vmatprep.subr.mxu1 %v2449_v25 }
 0x328   :  { %829 = vmatpush1.msra.mxu1 %v2454_v26 }
 0x329   :  { %1150 = vmatprep.subr.mxu1 %v2406_v2 }
 0x3d9   :  { %v526_v15 = vpop.f32.mrf.mxu1 }
 0x3da   :  { %v533_v22 = vadd.f32 %v526_v15, %v2511_v44 }
 0x3db   :  { %v528_v27 = vpop.f32.mrf.mxu1 }
 0x3dc   :  { %2080 = vtanh.f32 %v533_v22  ;;  %v536_v28 = vadd.f32 %v528_v27, %v2534_v13  ;;  %v1941_v2 = vmul.f32 -1.442695, %v533_v22 }
 0x3de   :  { %2082 = vtanh.f32 %v536_v28  ;;  %v1942_v33 = vmul.f32 -1.442695, %v536_v28 }
 0x3df   :  { %2084 = vpow2.f32 %v1941_v2 }
 0x3e0   :  { %2086 = vpow2.f32 %v1942_v33 }
 0x3e9   :  { %v2081_v29 = vpop.eup %2080 }
 0x3ea   :  { %550 = vrot.lane.b32.xlu1 %v2081_v29, %s2330_s2 }
 0x3eb   :  { %v2083_v31 = vpop.eup %2082 }
 0x3ec   :  { %574 = vrot.lane.b32.xlu0 %v2083_v31, %s2330_s2  ;;  %v2085_v44 = vpop.eup %2084 }
 0x3ed   :  { %v2087_v34 = vpop.eup %2086  ;;  %v540_v35 = vadd.f32 1.0, %v2085_v44 }
 0x3ee   :  { %545 = vrot.lane.b32.xlu1 %v440_v32, %s2330_s2  ;;  %v568_v13 = vadd.f32 1.0, %v2087_v34 }
 0x3ef   :  { %2088 = vrcp.f32 %v540_v35 }
 0x3f0   :  { %2090 = vrcp.f32 %v568_v13 }
 0x3fc   :  { %v2089_v36 = vpop.eup %2088 }
 0x3fd   :  { %v2091_v38 = vpop.eup %2090 }
 0x3fe   :  { %v572_v49 = vmul.f32 %v2091_v38, %v440_v32 }
 0x45c   :  { %v551_v37 = vpop.permute.xlu1 %550 }
 0x45d   :  { %v553_v39 = vmul.f32 %v2089_v36, %v551_v37 }
 0x45e   :  { %v575_v40 = vpop.permute.xlu0 %574 }
 0x45f   :  { %555 = vrot.lane.b32.xlu0 %v553_v39, %s2330_s2  ;;  %v577_v41 = vmul.f32 %v2091_v38, %v575_v40 }
 0x460   :  { %v546_v43 = vpop.permute.xlu1 %545 }
 0x461   :  { %579 = vrot.lane.b32.xlu1 %v577_v41, %s2330_s2  ;;  %v548_v45 = vmul.f32 %v2089_v36, %v546_v43 }
 0x4d1   :  { %v556_v46 = vpop.permute.xlu0 %555 }
 0x4d2   :  { %v558_v48 = vadd.f32 %v556_v46, %v548_v45 }
 0x4d3   :  { %v580_v51 = vpop.permute.xlu1 %579 }
 0x4d4   :  { %2092 = vtanh.f32 %v558_v48  ;;  %v582_v52 = vadd.f32 %v580_v51, %v572_v49 }
 0x4d6   :  { %2094 = vtanh.f32 %v582_v52 }
 0x4e1   :  { %v2093_v54 = vpop.eup %2092 }
 0x4e2   :  { %561 = vrot.lane.b32.xlu0 %v2093_v54, %s2330_s2 }
 0x4e3   :  { %v2095_v56 = vpop.eup %2094 }
 0x4e4   :  { %585 = vrot.lane.b32.xlu1 %v2095_v56, %s2330_s2 }
 0x554   :  { %v562_v58 = vpop.permute.xlu0 %561 }
 0x555   :  { %v564_v60 = vmul.f32 %v2089_v36, %v562_v58 }
 0x556   :  { %v586_v62 = vpop.permute.xlu1 %585 }
 0x557   :  { %590 = vrot.lane.b32.xlu0 %v564_v60, %s2331_s27  ;;  %v2580_v5 = vmul.f32 %v2091_v38, %v586_v62 }
 0x559   :  { %601 = vrot.lane.b32.xlu1 %v2580_v5, %s2332_s28 }
 0x55b   :  { %606 = vrot.lane.b32.xlu0 %v558_v48, %s2332_s28 }
 0x5c9   :  { %v591_v7 = vpop.permute.xlu0 %590 }
 0x5ca   :  { %594 = vst.msk [vmem:[#allocation3 + $0x8] sm:$0xff] %vm123_vm0, %v591_v7 }
 0x5cb   :  { %v602_v11 = vpop.permute.xlu1 %601 }
 0x5cc   :  { %v604_v15 = vsel %vm123_vm0, %v591_v7, %v602_v11 }
 0x5cd   :  { %1943 = vmatmul.mubr.msk.f32.vlgmr.msra.gmra.mxu0 %vm293_vm1, %v604_v15  ;;  %v607_v31 = vpop.permute.xlu0 %606 }
 0x5ce   :  { %984 = vmatpush1.msra.mxu0 %v2409_v4  ;;  %1031 = vmatprep.mubr.f32.mxu0 %v2329_v0  ;;  %v609_v2 = vsel %vm123_vm0, %v607_v31, %v582_v52 }
 0x5cf   :  { %985 = vmatprep.subr.mxu0 %v2411_v6 }
 0x5d0   :  { %986 = vmatpush1.msra.mxu0 %v2414_v8 }
 0x5d1   :  { %987 = vmatprep.subr.mxu0 %v2417_v10 }
 0x5d2   :  { %988 = vmatpush1.msra.mxu0 %v2419_v12 }
 0x5d3   :  { %989 = vmatprep.subr.mxu0 %v2422_v14 }
 0x5d4   :  { %990 = vmatpush1.msra.mxu0 %v2425_v16 }
 0x5d5   :  { %991 = vmatprep.subr.mxu0 %v2428_v18 }
 0x5d6   :  { %992 = vmatpush1.msra.mxu0 %v2431_v19 }
 0x5d7   :  { %993 = vmatprep.subr.mxu0 %v2434_v20 }
 0x5d8   :  { %994 = vmatpush1.msra.mxu0 %v2438_v21 }
 0x5d9   :  { %995 = vmatprep.subr.mxu0 %v2442_v23 }
 0x5da   :  { %996 = vmatpush1.msra.mxu0 %v2445_v24 }
 0x5db   :  { %997 = vmatprep.subr.mxu0 %v2449_v25 }
 0x5dc   :  { %998 = vmatpush1.msra.mxu0 %v2454_v26 }
 0x68d   :  { %v695_v22 = vpop.f32.mrf.mxu0 }
 0x68e   :  { %v702_v27 = vadd.f32 %v695_v22, %v2515_v50 }
 0x68f   :  { %v697_v28 = vpop.f32.mrf.mxu0 }
 0x690   :  { %2096 = vtanh.f32 %v702_v27  ;;  %v705_v29 = vadd.f32 %v697_v28, %v2529_v3  ;;  %v1944_v33 = vmul.f32 -1.442695, %v702_v27 }
 0x692   :  { %2098 = vtanh.f32 %v705_v29  ;;  %v1945_v44 = vmul.f32 -1.442695, %v705_v29 }
 0x693   :  { %2100 = vpow2.f32 %v1944_v33 }
 0x694   :  { %2102 = vpow2.f32 %v1945_v44 }
 0x69d   :  { %v2097_v30 = vpop.eup %2096 }
 0x69e   :  { %719 = vrot.lane.b32.xlu1 %v2097_v30, %s2330_s2 }
 0x69f   :  { %v2099_v32 = vpop.eup %2098 }
 0x6a0   :  { %743 = vrot.lane.b32.xlu0 %v2099_v32, %s2330_s2  ;;  %v2101_v50 = vpop.eup %2100 }
 0x6a1   :  { %v2103_v34 = vpop.eup %2102  ;;  %v709_v35 = vadd.f32 1.0, %v2101_v50 }
 0x6a2   :  { %714 = vrot.lane.b32.xlu1 %v609_v2, %s2330_s2  ;;  %v737_v3 = vadd.f32 1.0, %v2103_v34 }
 0x6a3   :  { %2104 = vrcp.f32 %v709_v35 }
 0x6a4   :  { %2106 = vrcp.f32 %v737_v3 }
 0x6b0   :  { %v2105_v13 = vpop.eup %2104 }
 0x6b1   :  { %v2107_v39 = vpop.eup %2106 }
 0x6b2   :  { %v741_v48 = vmul.f32 %v2107_v39, %v609_v2 }
 0x710   :  { %v720_v36 = vpop.permute.xlu1 %719 }
 0x711   :  { %v722_v37 = vmul.f32 %v2105_v13, %v720_v36 }
 0x712   :  { %v744_v38 = vpop.permute.xlu0 %743 }
 0x713   :  { %724 = vrot.lane.b32.xlu0 %v722_v37, %s2330_s2  ;;  %v746_v40 = vmul.f32 %v2107_v39, %v744_v38 }
 0x714   :  { %v715_v41 = vpop.permute.xlu1 %714 }
 0x715   :  { %748 = vrot.lane.b32.xlu1 %v746_v40, %s2330_s2  ;;  %v717_v43 = vmul.f32 %v2105_v13, %v715_v41 }
 0x785   :  { %v725_v45 = vpop.permute.xlu0 %724 }
 0x786   :  { %v727_v46 = vadd.f32 %v725_v45, %v717_v43 }
 0x787   :  { %v749_v49 = vpop.permute.xlu1 %748 }
 0x788   :  { %2108 = vtanh.f32 %v727_v46  ;;  %v751_v51 = vadd.f32 %v749_v49, %v741_v48 }
 0x78a   :  { %2110 = vtanh.f32 %v751_v51 }
 0x795   :  { %v2109_v52 = vpop.eup %2108 }
 0x796   :  { %730 = vrot.lane.b32.xlu0 %v2109_v52, %s2330_s2 }
 0x797   :  { %v2111_v54 = vpop.eup %2110 }
 0x798   :  { %754 = vrot.lane.b32.xlu1 %v2111_v54, %s2330_s2 }
 0x808   :  { %v731_v56 = vpop.permute.xlu0 %730 }
 0x809   :  { %v733_v58 = vmul.f32 %v2105_v13, %v731_v56 }
 0x80a   :  { %v755_v60 = vpop.permute.xlu1 %754 }
 0x80b   :  { %759 = vrot.lane.b32.xlu0 %v733_v58, %s2331_s27  ;;  %v2615_v62 = vmul.f32 %v2107_v39, %v755_v60 }
 0x80d   :  { %770 = vrot.lane.b32.xlu1 %v2615_v62, %s2332_s28 }
 0x80f   :  { %775 = vrot.lane.b32.xlu0 %v727_v46, %s2332_s28 }
 0x87d   :  { %v760_v7 = vpop.permute.xlu0 %759 }
 0x87e   :  { %763 = vst.msk [vmem:[#allocation3 + $0x10] sm:$0xff] %vm123_vm0, %v760_v7 }
 0x87f   :  { %v771_v11 = vpop.permute.xlu1 %770 }
 0x880   :  { %v773_v15 = vsel %vm123_vm0, %v760_v7, %v771_v11 }
 0x881   :  { %1946 = vmatmul.mubr.msk.f32.vlgmr.msra.gmra.mxu1 %vm293_vm1, %v773_v15 }
 0x882   :  { %1151 = vmatpush1.msra.mxu1 %v2409_v4  ;;  %1198 = vmatprep.mubr.f32.mxu1 %v2329_v0 }
 0x883   :  { %1152 = vmatprep.subr.mxu1 %v2411_v6 }
 0x884   :  { %1153 = vmatpush1.msra.mxu1 %v2414_v8 }
 0x885   :  { %1154 = vmatprep.subr.mxu1 %v2417_v10 }
 0x886   :  { %1155 = vmatpush1.msra.mxu1 %v2419_v12 }
 0x887   :  { %1156 = vmatprep.subr.mxu1 %v2422_v14  ;;  %v776_v14 = vpop.permute.xlu0 %775 }
 0x888   :  { %1157 = vmatpush1.msra.mxu1 %v2425_v16 }
 0x889   :  { %1158 = vmatprep.subr.mxu1 %v2428_v18  ;;  %v778_v18 = vsel %vm123_vm0, %v776_v14, %v751_v51 }
 0x88a   :  { %1159 = vmatpush1.msra.mxu1 %v2431_v19 }
 0x88b   :  { %1160 = vmatprep.subr.mxu1 %v2434_v20 }
 0x88c   :  { %1161 = vmatpush1.msra.mxu1 %v2438_v21 }
 0x88d   :  { %1162 = vmatprep.subr.mxu1 %v2442_v23 }
 0x88e   :  { %1163 = vmatpush1.msra.mxu1 %v2445_v24 }
 0x88f   :  { %1164 = vmatprep.subr.mxu1 %v2449_v25 }
 0x890   :  { %1165 = vmatpush1.msra.mxu1 %v2454_v26 }
 0x941   :  { %v864_v4 = vpop.f32.mrf.mxu1 }
 0x942   :  { %v871_v6 = vadd.f32 %v864_v4, %v2519_v55 }
 0x943   :  { %v866_v8 = vpop.f32.mrf.mxu1 }
 0x944   :  { %2112 = vtanh.f32 %v871_v6  ;;  %v874_v10 = vadd.f32 %v866_v8, %v2525_v61  ;;  %v1947_v19 = vmul.f32 -1.442695, %v871_v6 }
 0x946   :  { %2114 = vtanh.f32 %v874_v10  ;;  %v1948_v20 = vmul.f32 -1.442695, %v874_v10 }
 0x947   :  { %2116 = vpow2.f32 %v1947_v19 }
 0x948   :  { %2118 = vpow2.f32 %v1948_v20 }
 0x951   :  { %v2113_v12 = vpop.eup %2112 }
 0x952   :  { %888 = vrot.lane.b32.xlu1 %v2113_v12, %s2330_s2 }
 0x953   :  { %v2115_v16 = vpop.eup %2114 }
 0x954   :  { %912 = vrot.lane.b32.xlu0 %v2115_v16, %s2330_s2  ;;  %v2117_v21 = vpop.eup %2116 }
 0x955   :  { %v2119_v23 = vpop.eup %2118  ;;  %v878_v24 = vadd.f32 1.0, %v2117_v21 }
 0x956   :  { %883 = vrot.lane.b32.xlu1 %v778_v18, %s2330_s2  ;;  %v906_v25 = vadd.f32 1.0, %v2119_v23 }
 0x957   :  { %2120 = vrcp.f32 %v878_v24 }
 0x958   :  { %2122 = vrcp.f32 %v906_v25 }
 0x964   :  { %v2121_v26 = vpop.eup %2120 }
 0x965   :  { %v2123_v22 = vpop.eup %2122 }
 0x966   :  { %v910_v2 = vmul.f32 %v2123_v22, %v778_v18 }
 0x9c4   :  { %v889_v55 = vpop.permute.xlu1 %888 }
 0x9c5   :  { %v891_v61 = vmul.f32 %v2121_v26, %v889_v55 }
 0x9c6   :  { %v913_v27 = vpop.permute.xlu0 %912 }
 0x9c7   :  { %893 = vrot.lane.b32.xlu0 %v891_v61, %s2330_s2  ;;  %v915_v28 = vmul.f32 %v2123_v22, %v913_v27 }
 0x9c8   :  { %v884_v29 = vpop.permute.xlu1 %883 }
 0x9c9   :  { %917 = vrot.lane.b32.xlu1 %v915_v28, %s2330_s2  ;;  %v886_v30 = vmul.f32 %v2121_v26, %v884_v29 }
 0xa39   :  { %v894_v31 = vpop.permute.xlu0 %893 }
 0xa3a   :  { %v896_v32 = vadd.f32 %v894_v31, %v886_v30 }
 0xa3b   :  { %v918_v33 = vpop.permute.xlu1 %917 }
 0xa3c   :  { %2124 = vtanh.f32 %v896_v32  ;;  %v920_v44 = vadd.f32 %v918_v33, %v910_v2 }
 0xa3e   :  { %2126 = vtanh.f32 %v920_v44 }
 0xa49   :  { %v2125_v50 = vpop.eup %2124 }
 0xa4a   :  { %899 = vrot.lane.b32.xlu0 %v2125_v50, %s2330_s2 }
 0xa4b   :  { %v2127_v34 = vpop.eup %2126 }
 0xa4c   :  { %923 = vrot.lane.b32.xlu1 %v2127_v34, %s2330_s2 }
 0xabc   :  { %v900_v35 = vpop.permute.xlu0 %899 }
 0xabd   :  { %v902_v3 = vmul.f32 %v2121_v26, %v900_v35 }
 0xabe   :  { %v924_v13 = vpop.permute.xlu1 %923 }
 0xabf   :  { %928 = vrot.lane.b32.xlu0 %v902_v3, %s2331_s27  ;;  %v2650_v36 = vmul.f32 %v2123_v22, %v924_v13 }
 0xac1   :  { %939 = vrot.lane.b32.xlu1 %v2650_v36, %s2332_s28 }
 0xac3   :  { %944 = vrot.lane.b32.xlu0 %v896_v32, %s2332_s28 }
 0xb31   :  { %v929_v37 = vpop.permute.xlu0 %928 }
 0xb32   :  { %932 = vst.msk [vmem:[#allocation3 + $0x18] sm:$0xff] %vm123_vm0, %v929_v37 }
 0xb33   :  { %v940_v39 = vpop.permute.xlu1 %939 }
 0xb34   :  { %v942_v38 = vsel %vm123_vm0, %v929_v37, %v940_v39 }
 0xb35   :  { %1949 = vmatmul.mubr.msk.f32.vlgmr.msra.gmra.mxu0 %vm293_vm1, %v942_v38  ;;  %v945_v48 = vpop.permute.xlu0 %944 }
 0xb36   :  { %1365 = vmatprep.mubr.f32.mxu0 %v2329_v0  ;;  %v947_v51 = vsel %vm123_vm0, %v945_v48, %v920_v44 }
 0xbf5   :  { %v1033_v40 = vpop.f32.mrf.mxu0 }
 0xbf6   :  { %v1039_v41 = vadd.f32 %v1033_v40, %v2523_v59 }
 0xbf7   :  { %v1035_v43 = vpop.f32.mrf.mxu0 }
 0xbf8   :  { %2128 = vtanh.f32 %v1039_v41  ;;  %v1041_v45 = vadd.f32 %v1035_v43, %v2521_v57  ;;  %v1950_v52 = vmul.f32 -1.442695, %v1039_v41 }
 0xbfa   :  { %2130 = vtanh.f32 %v1041_v45  ;;  %v1951_v54 = vmul.f32 -1.442695, %v1041_v45 }
 0xbfb   :  { %2132 = vpow2.f32 %v1950_v52  ;;  %v1296_v52 = vld [vmem:[#allocation10 + $0x70] sm:$0xff] }
 0xbfc   :  { %2134 = vpow2.f32 %v1951_v54  ;;  %v1295_v54 = vld [vmem:[#allocation10 + $0x68] sm:$0xff] }
 0xc05   :  { %v2129_v46 = vpop.eup %2128 }
 0xc06   :  { %1055 = vrot.lane.b32.xlu1 %v2129_v46, %s2330_s2 }
 0xc07   :  { %v2131_v49 = vpop.eup %2130 }
 0xc08   :  { %1079 = vrot.lane.b32.xlu0 %v2131_v49, %s2330_s2  ;;  %v2133_v59 = vpop.eup %2132 }
 0xc09   :  { %v2135_v56 = vpop.eup %2134  ;;  %v1045_v58 = vadd.f32 1.0, %v2133_v59  ;;  %v1294_v59 = vld [vmem:[#allocation10 + $0x60] sm:$0xff] }
 0xc0a   :  { %1050 = vrot.lane.b32.xlu1 %v947_v51, %s2330_s2  ;;  %v1073_v57 = vadd.f32 1.0, %v2135_v56  ;;  %v1293_v56 = vld [vmem:[#allocation10 + $0x58] sm:$0xff] }
 0xc0b   :  { %2136 = vrcp.f32 %v1045_v58  ;;  %v1292_v58 = vld [vmem:[#allocation10 + $0x50] sm:$0xff] }
 0xc0c   :  { %2138 = vrcp.f32 %v1073_v57  ;;  %v1291_v57 = vld [vmem:[#allocation10 + $0x48] sm:$0xff] }
 0xc18   :  { %v2137_v60 = vpop.eup %2136 }
 0xc19   :  { %v2139_v15 = vpop.eup %2138 }
 0xc1a   :  { %v1077_v16 = vmul.f32 %v2139_v15, %v947_v51  ;;  %v1297_v51 = vld [vmem:[#allocation10 + $0x78] sm:$0xff] }
 0xc1b   :  { %1317 = vmatprep.subr.mxu0 %v1297_v51  ;;  %1484 = vmatprep.subr.mxu1 %v1297_v51 }
 0xc1c   :  { %1318 = vmatpush1.msra.mxu0 %v1296_v52 }
 0xc1d   :  { %1319 = vmatprep.subr.mxu0 %v1295_v54 }
 0xc1e   :  { %1320 = vmatpush1.msra.mxu0 %v1294_v59 }
 0xc1f   :  { %1321 = vmatprep.subr.mxu0 %v1293_v56 }
 0xc20   :  { %1322 = vmatpush1.msra.mxu0 %v1292_v58 }
 0xc21   :  { %1323 = vmatprep.subr.mxu0 %v1291_v57 }
 0xc78   :  { %v1056_v7 = vpop.permute.xlu1 %1055 }
 0xc79   :  { %v1058_v11 = vmul.f32 %v2137_v60, %v1056_v7 }
 0xc7a   :  { %v1080_v4 = vpop.permute.xlu0 %1079 }
 0xc7b   :  { %1060 = vrot.lane.b32.xlu0 %v1058_v11, %s2330_s2  ;;  %v1082_v6 = vmul.f32 %v2139_v15, %v1080_v4  ;;  %v1289_v11 = vld [vmem:[#allocation10 + $0x38] sm:$0xff]  ;;  %v1287_v4 = vld [vmem:[#allocation10 + $0x28] sm:$0xff] }
 0xc7c   :  { %v1051_v8 = vpop.permute.xlu1 %1050 }
 0xc7d   :  { %1084 = vrot.lane.b32.xlu1 %v1082_v6, %s2330_s2  ;;  %v1053_v10 = vmul.f32 %v2137_v60, %v1051_v8  ;;  %v1286_v8 = vld [vmem:[#allocation10 + $0x20] sm:$0xff] }
 0xced   :  { %v1061_v12 = vpop.permute.xlu0 %1060 }
 0xcee   :  { %v1063_v14 = vadd.f32 %v1061_v12, %v1053_v10  ;;  %v1285_v10 = vld [vmem:[#allocation10 + $0x18] sm:$0xff]  ;;  %v1284_v12 = vld [vmem:[#allocation10 + $0x10] sm:$0xff] }
 0xcef   :  { %v1085_v18 = vpop.permute.xlu1 %1084 }
 0xcf0   :  { %2140 = vtanh.f32 %v1063_v14  ;;  %v1087_v19 = vadd.f32 %v1085_v18, %v1077_v16  ;;  %v1282_v16 = vld [vmem:[#allocation10] sm:$0xff] }
 0xcf2   :  { %2142 = vtanh.f32 %v1087_v19 }
 0xcfd   :  { %v2141_v20 = vpop.eup %2140 }
 0xcfe   :  { %1066 = vrot.lane.b32.xlu0 %v2141_v20, %s2330_s2 }
 0xcff   :  { %v2143_v21 = vpop.eup %2142 }
 0xd00   :  { %1090 = vrot.lane.b32.xlu1 %v2143_v21, %s2330_s2 }
 0xd70   :  { %v1067_v23 = vpop.permute.xlu0 %1066 }
 0xd71   :  { %v1069_v24 = vmul.f32 %v2137_v60, %v1067_v23  ;;  %v1290_v60 = vld [vmem:[#allocation10 + $0x40] sm:$0xff] }
 0xd72   :  { %v1091_v25 = vpop.permute.xlu1 %1090  ;;  %1324 = vmatpush1.msra.mxu0 %v1290_v60 }
 0xd73   :  { %1095 = vrot.lane.b32.xlu0 %v1069_v24, %s2331_s27  ;;  %v2670_v26 = vmul.f32 %v2139_v15, %v1091_v25  ;;  %v1288_v15 = vld [vmem:[#allocation10 + $0x30] sm:$0xff]  ;;  %1325 = vmatprep.subr.mxu0 %v1289_v11 }
 0xd74   :  { %1326 = vmatpush1.msra.mxu0 %v1288_v15 }
 0xd75   :  { %1106 = vrot.lane.b32.xlu1 %v2670_v26, %s2332_s28  ;;  %1327 = vmatprep.subr.mxu0 %v1287_v4 }
 0xd76   :  { %1328 = vmatpush1.msra.mxu0 %v1286_v8 }
 0xd77   :  { %1111 = vrot.lane.b32.xlu0 %v1063_v14, %s2332_s28  ;;  %1329 = vmatprep.subr.mxu0 %v1285_v10  ;;  %v1283_v14 = vld [vmem:[#allocation10 + $0x8] sm:$0xff] }
 0xd78   :  { %1330 = vmatpush1.msra.mxu0 %v1284_v12 }
 0xd79   :  { %1331 = vmatprep.subr.mxu0 %v1283_v14 }
 0xd7a   :  { %1332 = vmatpush1.msra.mxu0 %v1282_v16 }
 0xde5   :  { %v1096_v55 = vpop.permute.xlu0 %1095 }
 0xde6   :  { %1099 = vst.msk [vmem:[#allocation3 + $0x20] sm:$0xff] %vm123_vm0, %v1096_v55 }
 0xde7   :  { %v1107_v61 = vpop.permute.xlu1 %1106 }
 0xde8   :  { %v1109_v22 = vsel %vm123_vm0, %v1096_v55, %v1107_v61 }
 0xde9   :  { %1952 = vmatmul.mubr.msk.f32.vlgmr.msra.gmra.mxu1 %vm293_vm1, %v1109_v22  ;;  %v1112_v32 = vpop.permute.xlu0 %1111 }
 0xdea   :  { %1532 = vmatprep.mubr.f32.mxu1 %v2329_v0  ;;  %v1114_v33 = vsel %vm123_vm0, %v1112_v32, %v1087_v19  ;;  %1485 = vmatpush1.msra.mxu1 %v1296_v52 }
 0xdeb   :  { %1486 = vmatprep.subr.mxu1 %v1295_v54 }
 0xdec   :  { %1487 = vmatpush1.msra.mxu1 %v1294_v59 }
 0xded   :  { %1488 = vmatprep.subr.mxu1 %v1293_v56 }
 0xdee   :  { %1489 = vmatpush1.msra.mxu1 %v1292_v58  ;;  %v2737_v58 = vld [vmem:[#allocation11 + $0x10] sm:$0xff] }
 0xdef   :  { %1490 = vmatprep.subr.mxu1 %v1291_v57  ;;  %v1608_v57 = vld [vmem:[#allocation3 + $0x10] sm:$0xff] }
 0xdf0   :  { %1491 = vmatpush1.msra.mxu1 %v1290_v60  ;;  %v2742_v60 = vld [vmem:[#allocation11 + $0x8] sm:$0xff] }
 0xdf1   :  { %1492 = vmatprep.subr.mxu1 %v1289_v11  ;;  %v1609_v11 = vld [vmem:[#allocation3 + $0x18] sm:$0xff] }
 0xdf2   :  { %1493 = vmatpush1.msra.mxu1 %v1288_v15  ;;  %v1610_v15 = vld [vmem:[#allocation3 + $0x20] sm:$0xff] }
 0xdf3   :  { %1494 = vmatprep.subr.mxu1 %v1287_v4 }
 0xdf4   :  { %1495 = vmatpush1.msra.mxu1 %v1286_v8 }
 0xdf5   :  { %1496 = vmatprep.subr.mxu1 %v1285_v10 }
 0xdf6   :  { %1497 = vmatpush1.msra.mxu1 %v1284_v12 }
 0xdf7   :  { %1498 = vmatprep.subr.mxu1 %v1283_v14 }
 0xdf8   :  { %1499 = vmatpush1.msra.mxu1 %v1282_v16 }
 0xea9   :  { %v1200_v27 = vpop.f32.mrf.mxu1 }
 0xeaa   :  { %v1206_v28 = vadd.f32 %v1200_v27, %v2527_v63 }
 0xeab   :  { %v1202_v29 = vpop.f32.mrf.mxu1 }
 0xeac   :  { %2144 = vtanh.f32 %v1206_v28  ;;  %v1208_v30 = vadd.f32 %v1202_v29, %v2517_v53  ;;  %v1953_v0 = vmul.f32 -1.442695, %v1206_v28 }
 0xeae   :  { %2146 = vtanh.f32 %v1208_v30  ;;  %v1954_v44 = vmul.f32 -1.442695, %v1208_v30 }
 0xeaf   :  { %2148 = vpow2.f32 %v1953_v0 }
 0xeb0   :  { %2150 = vpow2.f32 %v1954_v44 }
 0xeb9   :  { %v2145_v31 = vpop.eup %2144 }
 0xeba   :  { %1222 = vrot.lane.b32.xlu1 %v2145_v31, %s2330_s2 }
 0xebb   :  { %v2147_v2 = vpop.eup %2146 }
 0xebc   :  { %1246 = vrot.lane.b32.xlu0 %v2147_v2, %s2330_s2  ;;  %v2149_v63 = vpop.eup %2148 }
 0xebd   :  { %v2151_v50 = vpop.eup %2150  ;;  %v1212_v34 = vadd.f32 1.0, %v2149_v63 }
 0xebe   :  { %1217 = vrot.lane.b32.xlu1 %v1114_v33, %s2330_s2  ;;  %v1240_v53 = vadd.f32 1.0, %v2151_v50 }
 0xebf   :  { %2152 = vrcp.f32 %v1212_v34 }
 0xec0   :  { %2154 = vrcp.f32 %v1240_v53 }
 0xecc   :  { %v2685_v35 = vpop.eup %2152 }
 0xecd   :  { %v2688_v37 = vpop.eup %2154 }
 0xece   :  { %v1244_v46 = vmul.f32 %v2688_v37, %v1114_v33 }
 0xf2c   :  { %v1223_v3 = vpop.permute.xlu1 %1222 }
 0xf2d   :  { %v1225_v13 = vmul.f32 %v2685_v35, %v1223_v3 }
 0xf2e   :  { %v1247_v39 = vpop.permute.xlu0 %1246 }
 0xf2f   :  { %1227 = vrot.lane.b32.xlu0 %v1225_v13, %s2330_s2  ;;  %v1249_v38 = vmul.f32 %v2688_v37, %v1247_v39 }
 0xf30   :  { %v1218_v40 = vpop.permute.xlu1 %1217 }
 0xf31   :  { %1251 = vrot.lane.b32.xlu1 %v1249_v38, %s2330_s2  ;;  %v1220_v41 = vmul.f32 %v2685_v35, %v1218_v40 }
 0xfa1   :  { %v1228_v43 = vpop.permute.xlu0 %1227 }
 0xfa2   :  { %v2694_v45 = vadd.f32 %v1228_v43, %v1220_v41 }
 0xfa3   :  { %v1252_v48 = vpop.permute.xlu1 %1251 }
 0xfa4   :  { %2156 = vtanh.f32 %v2694_v45  ;;  %v2698_v49 = vadd.f32 %v1252_v48, %v1244_v46  ;;  %v2726_v46 = vld [vmem:[#allocation11 + $0x18] sm:$0xff] }
 0xfa5   :  { %2042 = vmatprep.subr.mxu1 %v2726_v46 }
 0xfa6   :  { %2158 = vtanh.f32 %v2698_v49 }
 0xfb1   :  { %v2157_v7 = vpop.eup %2156 }
 0xfb2   :  { %1233 = vrot.lane.b32.xlu0 %v2157_v7, %s2330_s2  ;;  %v2746_v7 = vld [vmem:[#allocation11] sm:$0xff] }
 0xfb3   :  { %v2159_v6 = vpop.eup %2158 }
 0xfb4   :  { %1257 = vrot.lane.b32.xlu1 %v2159_v6, %s2330_s2 }
0x1024   :  { %v1234_v18 = vpop.permute.xlu0 %1233 }
0x1025   :  { %v1236_v19 = vmul.f32 %v2685_v35, %v1234_v18 }
0x1026   :  { %v1258_v20 = vpop.permute.xlu1 %1257 }
0x1027   :  { %1262 = vrot.lane.b32.xlu0 %v1236_v19, %s2331_s27  ;;  %v2706_v21 = vmul.f32 %v2688_v37, %v1258_v20 }
0x1029   :  { %1273 = vrot.lane.b32.xlu1 %v2706_v21, %s2332_s28 }
0x102b   :  { %1278 = vrot.lane.b32.xlu0 %v2694_v45, %s2332_s28 }
0x1099   :  { %v1263_v23 = vpop.permute.xlu0 %1262 }
0x109a   :  { %1266 = vst.msk [vmem:[#allocation3 + $0x28] sm:$0xff] %vm123_vm0, %v1263_v23 }
0x109b   :  { %v1274_v24 = vpop.permute.xlu1 %1273 }
0x109c   :  { %v1276_v25 = vsel %vm123_vm0, %v1263_v23, %v1274_v24 }
0x109d   :  { %1955 = vmatmul.mubr.msk.f32.vlgmr.msra.gmra.mxu0 %vm293_vm1, %v1276_v25  ;;  %v1279_v29 = vpop.permute.xlu0 %1278 }
0x109e   :  { %v1281_v31 = vsel %vm123_vm0, %v1279_v29, %v2698_v49 }
0x10a1   :  { %v1611_v4 = vld [vmem:[#allocation3 + $0x28] sm:$0xff] }
0x115d   :  { %v1367_v55 = vpop.f32.mrf.mxu0 }
0x115e   :  { %v1373_v61 = vadd.f32 %v1367_v55, %v2531_v9 }
0x115f   :  { %v1369_v22 = vpop.f32.mrf.mxu0 }
0x1160   :  { %2160 = vtanh.f32 %v1373_v61  ;;  %v1375_v27 = vadd.f32 %v1369_v22, %v2513_v47  ;;  %v1956_v32 = vmul.f32 -1.442695, %v1373_v61 }
0x1162   :  { %2162 = vtanh.f32 %v1375_v27  ;;  %v1957_v2 = vmul.f32 -1.442695, %v1375_v27 }
0x1163   :  { %2164 = vpow2.f32 %v1956_v32 }
0x1164   :  { %2166 = vpow2.f32 %v1957_v2 }
0x116d   :  { %v2161_v28 = vpop.eup %2160 }
0x116e   :  { %1389 = vrot.lane.b32.xlu1 %v2161_v28, %s2330_s2 }
0x116f   :  { %v2163_v30 = vpop.eup %2162 }
0x1170   :  { %1413 = vrot.lane.b32.xlu0 %v2163_v30, %s2330_s2  ;;  %v2165_v9 = vpop.eup %2164 }
0x1171   :  { %v2167_v33 = vpop.eup %2166  ;;  %v1379_v47 = vadd.f32 1.0, %v2165_v9 }
0x1172   :  { %1384 = vrot.lane.b32.xlu1 %v1281_v31, %s2330_s2  ;;  %v1407_v0 = vadd.f32 1.0, %v2167_v33 }
0x1173   :  { %2168 = vrcp.f32 %v1379_v47 }
0x1174   :  { %2170 = vrcp.f32 %v1407_v0 }
0x1180   :  { %v2169_v44 = vpop.eup %2168 }
0x1181   :  { %v2171_v34 = vpop.eup %2170 }
0x1182   :  { %v1411_v38 = vmul.f32 %v2171_v34, %v1281_v31 }
0x11e0   :  { %v1390_v63 = vpop.permute.xlu1 %1389 }
0x11e1   :  { %v1392_v50 = vmul.f32 %v2169_v44, %v1390_v63 }
0x11e2   :  { %v1414_v53 = vpop.permute.xlu0 %1413 }
0x11e3   :  { %1394 = vrot.lane.b32.xlu0 %v1392_v50, %s2330_s2  ;;  %v1416_v35 = vmul.f32 %v2171_v34, %v1414_v53  ;;  %v1629_v50 = vld [vmem:[#allocation13 + $0x18] sm:$0xff]  ;;  %v1627_v53 = vld [vmem:[#allocation13 + $0x8] sm:$0xff] }
0x11e4   :  { %v1385_v3 = vpop.permute.xlu1 %1384  ;;  %2002 = vmatprep.subr.mxu0 %v1629_v50 }
0x11e5   :  { %1418 = vrot.lane.b32.xlu1 %v1416_v35, %s2330_s2  ;;  %v1387_v13 = vmul.f32 %v2169_v44, %v1385_v3  ;;  %2003 = vmatpush3.msra.mxu0 %v1629_v50  ;;  %v1626_v35 = vld [vmem:[#allocation13] sm:$0xff] }
0x1255   :  { %v1395_v37 = vpop.permute.xlu0 %1394 }
0x1256   :  { %v1397_v39 = vadd.f32 %v1395_v37, %v1387_v13 }
0x1257   :  { %v1419_v40 = vpop.permute.xlu1 %1418 }
0x1258   :  { %2172 = vtanh.f32 %v1397_v39  ;;  %v1421_v41 = vadd.f32 %v1419_v40, %v1411_v38 }
0x125a   :  { %2174 = vtanh.f32 %v1421_v41 }
0x1265   :  { %v2173_v43 = vpop.eup %2172 }
0x1266   :  { %1400 = vrot.lane.b32.xlu0 %v2173_v43, %s2330_s2 }
0x1267   :  { %v2175_v45 = vpop.eup %2174 }
0x1268   :  { %1424 = vrot.lane.b32.xlu1 %v2175_v45, %s2330_s2 }
0x12d8   :  { %v1401_v48 = vpop.permute.xlu0 %1400 }
0x12d9   :  { %v1403_v49 = vmul.f32 %v2169_v44, %v1401_v48 }
0x12da   :  { %v1425_v51 = vpop.permute.xlu1 %1424 }
0x12db   :  { %1429 = vrot.lane.b32.xlu0 %v1403_v49, %s2331_s27  ;;  %v2730_v52 = vmul.f32 %v2171_v34, %v1425_v51  ;;  %v1628_v34 = vld [vmem:[#allocation13 + $0x10] sm:$0xff] }
0x12dc   :  { %2004 = vmatprep.subr.mxu0 %v1628_v34 }
0x12dd   :  { %1440 = vrot.lane.b32.xlu1 %v2730_v52, %s2332_s28  ;;  %2005 = vmatpush3.msra.mxu0 %v1628_v34 }
0x12de   :  { %2006 = vmatprep.subr.mxu0 %v1627_v53 }
0x12df   :  { %2007 = vmatpush3.msra.mxu0 %v1627_v53 }
0x12e0   :  { %2008 = vmatprep.subr.mxu0 %v1626_v35 }
0x12e1   :  { %1445 = vrot.lane.b32.xlu1 %v1397_v39, %s2332_s28  ;;  %2009 = vmatpush3.msra.mxu0 %v1626_v35 }
0x12e2   :  { %2022 = vmatprep.subr.mxu0 %v2726_v46 }
0x134d   :  { %v1430_v54 = vpop.permute.xlu0 %1429 }
0x134e   :  { %1433 = vst.msk [vmem:[#allocation3 + $0x30] sm:$0xff] %vm123_vm0, %v1430_v54 }
0x134f   :  { %v1441_v59 = vpop.permute.xlu1 %1440 }
0x1350   :  { %v1443_v56 = vsel %vm123_vm0, %v1430_v54, %v1441_v59  ;;  %v1606_v59 = vld [vmem:[#allocation3] sm:$0xff] }
0x1351   :  { %1958 = vmatmul.mubr.msk.f32.vlgmr.msra.gmra.mxu1 %vm293_vm1, %v1443_v56 }
0x1352   :  { %2046 = vmatpush3.msra.mxu1 %v2726_v46  ;;  %2033 = vmatprep.mubr.msk.f32.mxu1 %vm123_vm0, %v1608_v57 }
0x1353   :  { %2043 = vmatprep.subr.mxu1 %v2737_v58  ;;  %v1446_v19 = vpop.permute.xlu1 %1445 }
0x1354   :  { %2047 = vmatpush3.msra.mxu1 %v2737_v58  ;;  %v1448_v20 = vsel %vm123_vm0, %v1446_v19, %v1421_v41 }
0x1355   :  { %2044 = vmatprep.subr.mxu1 %v2742_v60  ;;  %v1612_v6 = vld [vmem:[#allocation3 + $0x30] sm:$0xff] }
0x1356   :  { %2048 = vmatpush3.msra.mxu1 %v2742_v60 }
0x1357   :  { %2045 = vmatprep.subr.mxu1 %v2746_v7 }
0x1358   :  { %2049 = vmatpush3.msra.mxu1 %v2746_v7 }
0x1359   :  { %2034 = vmatmul.mubr.msk.f32.vlgmr.msra.gmra.mxu1 %vm123_vm0, %v1609_v11 }
0x135a   :  { %2036 = vmatprep.mubr.msk.f32.mxu1 %vm123_vm0, %v1610_v15 }
0x135d   :  { %2037 = vmatmul.mubr.msk.f32.gmra.mxu1 %vm123_vm0, %v1611_v4  ;;  %v1977_v4 = vld [vmem:[%s2825_s6] ss:$0 sm:$0xff]  ;;  %s2333_s6 = smov [#allocation14]  }
0x135e   :  { %2039 = vmatprep.mubr.msk.f32.mxu1 %vm123_vm0, %v1612_v6  ;;  %s1916_s8 = sshll.u32 %s2333_s6, 4  ;;  %s1917_s8 = int_to_ptr.vmem [resolvable:$true] %s1916_s8 }
0x135f   :  { %s2292_s9 = scalar_lea.vmem %s1917_s8, 1024  ;;  %p2297_p12 = scmp.lt.s32.totalorder %s1917_s8, %s1917_s8 }
0x1360   :  { %p2293_p11 = scmp.ne.s32.totalorder %s1917_s8, %s2292_s9  ;;  %p2298_p13 = scmp.lt.s32.totalorder %s2292_s9, %s2292_s9 }
0x1362   :  { %p2299_p0 = por %p2298_p13, %p2297_p12 }
0x1364   :  { %p2300_p1 = pnand %p2299_p0, %p2293_p11 }
0x1411   :  { %v1534_v8 = vpop.f32.mrf.mxu1 }
0x1412   :  { %v1540_v14 = vadd.f32 %v1534_v8, %v2536_v17 }
0x1413   :  { %v1536_v10 = vpop.f32.mrf.mxu1 }
0x1414   :  { %v1542_v12 = vadd.f32 %v1536_v10, %v2509_v42  ;;  %v1959_v24 = vmul.f32 -1.442695, %v1540_v14 }
0x1416   :  { %2176 = vtanh.f32 %v1542_v12  ;;  %v1960_v23 = vmul.f32 -1.442695, %v1542_v12 }
0x1417   :  { %2178 = vtanh.f32 %v1540_v14 }
0x1418   :  { %2180 = vpow2.f32 %v1960_v23 }
0x1419   :  { %2182 = vpow2.f32 %v1959_v24  ;;  %v2035_v57 = vpop.f32.mrf.mxu1 }
0x1423   :  { %v2177_v16 = vpop.eup %2176 }
0x1424   :  { %1580 = vrot.lane.b32.xlu0 %v2177_v16, %s2330_s2  ;;  %v2179_v18 = vpop.eup %2178 }
0x1425   :  { %v2181_v42 = vpop.eup %2180 }
0x1426   :  { %v1574_v25 = vadd.f32 1.0, %v2181_v42  ;;  %v2183_v17 = vpop.eup %2182 }
0x1427   :  { %v1546_v55 = vadd.f32 1.0, %v2183_v17 }
0x1428   :  { %1556 = vrot.lane.b32.xlu0 %v2179_v18, %s2330_s2  ;;  %2184 = vrcp.f32 %v1574_v25 }
0x1429   :  { %2186 = vrcp.f32 %v1546_v55 }
0x142c   :  { %1551 = vrot.lane.b32.xlu0 %v1448_v20, %s2330_s2 }
0x1435   :  { %v2185_v61 = vpop.eup %2184 }
0x1436   :  { %v2187_v28 = vpop.eup %2186  ;;  %v1578_v31 = vmul.f32 %v2185_v61, %v1448_v20 }
0x1496   :  { %v1581_v22 = vpop.permute.xlu0 %1580 }
0x1497   :  { %v1583_v27 = vmul.f32 %v2185_v61, %v1581_v22 }
0x1499   :  { %1585 = vrot.lane.b32.xlu1 %v1583_v27, %s2330_s2 }
0x149a   :  { %v1557_v29 = vpop.permute.xlu0 %1556 }
0x149b   :  { %v1559_v30 = vmul.f32 %v2187_v28, %v1557_v29 }
0x149d   :  { %1561 = vrot.lane.b32.xlu1 %v1559_v30, %s2330_s2 }
0x149e   :  { %v1552_v32 = vpop.permute.xlu0 %1551 }
0x149f   :  { %v1554_v33 = vmul.f32 %v2187_v28, %v1552_v32 }
0x150b   :  { %v1586_v2 = vpop.permute.xlu1 %1585 }
0x150c   :  { %v1588_v9 = vadd.f32 %v1586_v2, %v1578_v31 }
0x150e   :  { %2188 = vtanh.f32 %v1588_v9 }
0x150f   :  { %v1562_v47 = vpop.permute.xlu1 %1561 }
0x1510   :  { %v1564_v0 = vadd.f32 %v1562_v47, %v1554_v33 }
0x1512   :  { %2190 = vtanh.f32 %v1564_v0 }
0x151b   :  { %v2189_v44 = vpop.eup %2188 }
0x151c   :  { %1591 = vrot.lane.b32.xlu0 %v2189_v44, %s2330_s2 }
0x151f   :  { %v2191_v63 = vpop.eup %2190 }
0x1520   :  { %1567 = vrot.lane.b32.xlu1 %v2191_v63, %s2330_s2 }
0x1524   :  { %1435 = vrot.lane.b32.xlu1 %v2730_v52, %s2331_s27 }
0x1528   :  { %1101 = vrot.lane.b32.xlu1 %v2670_v26, %s2331_s27 }
0x152c   :  { %765 = vrot.lane.b32.xlu1 %v2615_v62, %s2331_s27 }
0x1530   :  { %427 = vrot.lane.b32.xlu1 %v2545_v1, %s2331_s27 }
0x158e   :  { %v1592_v26 = vpop.permute.xlu0 %1591 }
0x158f   :  { %v1594_v3 = vmul.f32 %v2185_v61, %v1592_v26 }
0x1591   :  { %1602 = vrot.lane.b32.xlu0 %v1594_v3, %s2331_s27 }
0x1592   :  { %v1568_v62 = vpop.permute.xlu1 %1567 }
0x1593   :  { %v1570_v39 = vmul.f32 %v2187_v28, %v1568_v62 }
0x1595   :  { %1268 = vrot.lane.b32.xlu0 %v2706_v21, %s2331_s27 }
0x1596   :  { %v1436_v1 = vpop.permute.xlu1 %1435 }
0x1597   :  { %1439 = vst.msk [vmem:[#allocation4 + $0x8] sm:$0xff] %vm123_vm0, %v1436_v1 }
0x1599   :  { %934 = vrot.lane.b32.xlu0 %v2650_v36, %s2331_s27 }
0x159a   :  { %v1102_v13 = vpop.permute.xlu1 %1101 }
0x159b   :  { %1105 = vst.msk [vmem:[#allocation4 + $0x18] sm:$0xff] %vm123_vm0, %v1102_v13 }
0x159d   :  { %596 = vrot.lane.b32.xlu0 %v2580_v5, %s2331_s27 }
0x159e   :  { %v766_v37 = vpop.permute.xlu1 %765  ;;  %v1615_v5 = vld [vmem:[#allocation4 + $0x8] sm:$0xff] }
0x159f   :  { %769 = vst.msk [vmem:[#allocation4 + $0x28] sm:$0xff] %vm123_vm0, %v766_v37 }
0x15a1   :  { %1596 = vrot.lane.b32.xlu0 %v1570_v39, %s2331_s27 }
0x15a2   :  { %v428_v38 = vpop.permute.xlu1 %427  ;;  %v1617_v48 = vld [vmem:[#allocation4 + $0x18] sm:$0xff] }
0x15a3   :  { %431 = vst.msk [vmem:[#allocation4 + $0x38] sm:$0xff] %vm123_vm0, %v428_v38 }
0x15aa   :  { %v1621_v54 = vld [vmem:[#allocation4 + $0x38] sm:$0xff] }
0x1603   :  { %v1603_v21 = vpop.permute.xlu0 %1602 }
0x1604   :  { %1605 = vst.msk [vmem:[#allocation4] sm:$0xff] %vm123_vm0, %v1603_v21 }
0x1607   :  { %v1269_v40 = vpop.permute.xlu0 %1268 }
0x1608   :  { %1272 = vst.msk [vmem:[#allocation4 + $0x10] sm:$0xff] %vm123_vm0, %v1269_v40 }
0x160b   :  { %v935_v36 = vpop.permute.xlu0 %934  ;;  %v1614_v41 = vld [vmem:[#allocation4] sm:$0xff] }
0x160c   :  { %938 = vst.msk [vmem:[#allocation4 + $0x20] sm:$0xff] %vm123_vm0, %v935_v36  ;;  %2010 = vmatprep.mubr.msk.f32.mxu0 %vm123_vm0, %v1614_v41 }
0x160d   :  { %2011 = vmatmul.mubr.msk.f32.vlgmr.msra.gmra.mxu0 %vm123_vm0, %v1615_v5 }
0x160e   :  { %2023 = vmatpush3.msra.mxu0 %v2726_v46  ;;  %v1619_v46 = vld [vmem:[#allocation4 + $0x28] sm:$0xff] }
0x160f   :  { %v597_v43 = vpop.permute.xlu0 %596  ;;  %v1616_v45 = vld [vmem:[#allocation4 + $0x10] sm:$0xff]  ;;  %2024 = vmatprep.subr.mxu0 %v2737_v58 }
0x1610   :  { %600 = vst.msk [vmem:[#allocation4 + $0x30] sm:$0xff] %vm123_vm0, %v597_v43  ;;  %2013 = vmatprep.mubr.msk.f32.mxu0 %vm123_vm0, %v1616_v45  ;;  %2025 = vmatpush3.msra.mxu0 %v2737_v58  ;;  %v1607_v58 = vld [vmem:[#allocation3 + $0x8] sm:$0xff] }
0x1611   :  { %2014 = vmatmul.mubr.msk.f32.gmra.mxu0 %vm123_vm0, %v1617_v48  ;;  %2026 = vmatprep.subr.mxu0 %v2742_v60 }
0x1612   :  { %2027 = vmatpush3.msra.mxu0 %v2742_v60 }
0x1613   :  { %v1597_v49 = vpop.permute.xlu0 %1596  ;;  %v1618_v51 = vld [vmem:[#allocation4 + $0x20] sm:$0xff]  ;;  %2028 = vmatprep.subr.mxu0 %v2746_v7 }
0x1614   :  { %1600 = vst.msk [vmem:[#allocation3 + $0x38] sm:$0xff] %vm123_vm0, %v1597_v49  ;;  %2016 = vmatprep.mubr.msk.f32.mxu0 %vm123_vm0, %v1618_v51  ;;  %2029 = vmatpush3.msra.mxu0 %v2746_v7  ;;  %v1859_v7 = vpop.f32.mrf.mxu1 }
0x1615   :  { %2017 = vmatmul.mubr.msk.f32.gmra.mxu0 %vm123_vm0, %v1619_v46 }
0x1616   :  { %v2038_v8 = vpop.f32.mrf.mxu1 }
0x1617   :  { %v1620_v52 = vld [vmem:[#allocation4 + $0x30] sm:$0xff] }
0x1618   :  { %2019 = vmatprep.mubr.msk.f32.mxu0 %vm123_vm0, %v1620_v52  ;;  %v1869_v20 = vpop.f32.mrf.mxu1 }
0x1619   :  { %2020 = vmatmul.mubr.msk.f32.gmra.mxu0 %vm123_vm0, %v1621_v54 }
0x161a   :  { %2030 = vmatprep.mubr.msk.f32.mxu0 %vm123_vm0, %v1606_v59 }
0x161b   :  { %v1613_v56 = vld [vmem:[#allocation3 + $0x38] sm:$0xff] }
0x161c   :  { %2040 = vmatmul.mubr.msk.f32.gmra.mxu1 %vm123_vm0, %v1613_v56 }
0x161d   :  { %2031 = vmatmul.mubr.msk.f32.vlgmr.msra.gmra.mxu0 %vm123_vm0, %v1607_v58 }
0x16cd   :  { %v2012_v60 = vpop.f32.mrf.mxu0 }
0x16cf   :  { %v1720_v11 = vpop.f32.mrf.mxu0 }
0x16d1   :  { %v2015_v15 = vpop.f32.mrf.mxu0 }
0x16d2   :  { %v1865_v6 = vadd.f32 %v2035_v57, %v2015_v15 }
0x16d3   :  { %v1730_v10 = vpop.f32.mrf.mxu0 }
0x16d4   :  { %v1898_v12 = vadd.f32 %v1977_v4, %v1865_v6  ;;  %v1860_v14 = vadd.f32 %v1859_v7, %v1730_v10 }
0x16d5   :  { %v2018_v16 = vpop.f32.mrf.mxu0 }
0x16d6   :  { %1906 = vst [vmem:[#allocation14 + $0x18] sm:$0xff] %v1898_v12  ;;  %v1897_v18 = vadd.f32 %v1977_v4, %v1860_v14  ;;  %v1875_v19 = vadd.f32 %v2038_v8, %v2018_v16 }
0x16d7   :  { %v1740_v23 = vpop.f32.mrf.mxu0 }
0x16d8   :  { %1905 = vst [vmem:[#allocation14 + $0x10] sm:$0xff] %v1897_v18  ;;  %v1900_v24 = vadd.f32 %v1977_v4, %v1875_v19  ;;  %v1870_v42 = vadd.f32 %v1869_v20, %v1740_v23 }
0x16d9   :  { %v2021_v25 = vpop.f32.mrf.mxu0 }
0x16da   :  { %1908 = vst [vmem:[#allocation14 + $0x28] sm:$0xff] %v1900_v24  ;;  %v1899_v17 = vadd.f32 %v1977_v4, %v1870_v42 }
0x16db   :  { %v1750_v55 = vpop.f32.mrf.mxu0 }
0x16dc   :  { %1907 = vst [vmem:[#allocation14 + $0x20] sm:$0xff] %v1899_v17  ;;  %v2041_v61 = vpop.f32.mrf.mxu1 }
0x16dd   :  { %v1885_v22 = vadd.f32 %v2041_v61, %v2021_v25  ;;  %v2032_v27 = vpop.f32.mrf.mxu0 }
0x16de   :  { %v1855_v28 = vadd.f32 %v2032_v27, %v2012_v60  ;;  %v1879_v29 = vpop.f32.mrf.mxu1 }
0x16df   :  { %v1902_v30 = vadd.f32 %v1977_v4, %v1885_v22  ;;  %v1880_v31 = vadd.f32 %v1879_v29, %v1750_v55  ;;  %v1849_v32 = vpop.f32.mrf.mxu0 }
0x16e0   :  { %v1896_v2 = vadd.f32 %v1977_v4, %v1855_v28  ;;  %v1850_v9 = vadd.f32 %v1849_v32, %v1720_v11 }
0x16e1   :  { %1910 = vst [vmem:[#allocation14 + $0x38] sm:$0xff] %v1902_v30  ;;  %v1901_v33 = vadd.f32 %v1977_v4, %v1880_v31 }
0x16e2   :  { %1904 = vst [vmem:[#allocation14 + $0x8] sm:$0xff] %v1896_v2  ;;  %v1895_v47 = vadd.f32 %v1977_v4, %v1850_v9 }
0x16e3   :  { %1909 = vst [vmem:[#allocation14 + $0x30] sm:$0xff] %v1901_v33 }
0x16e4   :  { %1903 = vst [vmem:[#allocation14] sm:$0xff] %v1895_v47 }
0x16e5   :  { %2303 = shalt.err (!%p2300_p1)
}
0x16e6   :  { %1922 = dma.vmem_to_hbm [thread:$0]  %s1917_s8, 1024, %s2826_s7, [#allocation7], %s2325_s13, %s2325_s13, %s2326_s14  }
0x16e7   :  { %2318 = dma.done.wait [#allocation7], 1024  }
0x16e8   :  { %2319 = vsyncadd [#allocation7], 4294966272 }
0x16e9   :  { %1926 = vsyncpa [#allocation6], 1 }
0x16ea   :  { %1927 = vsyncpa [#allocation9], 1 }
0x16eb   :  { %1928 = vsyncpa [#allocation12], 1 }
0x16ec   :  { %1929 = vsyncpa [#allocation7], 1 }

</bundles_post_ra>
